<compile_context>
chip_gen: v6e
topology: v6e:2x2x1
jax: 0.10.0
libtpu: 0.0.40
codegen_flags: <defaults>
</compile_context>

<pallas_src>
import functools

import jax
import jax.numpy as jnp
from jax.experimental import pallas as pl
from jax.experimental.pallas import tpu as pltpu


def _round_up(x, m):
    return ((x + m - 1) // m) * m


def _pick_tile(total, cap, align):
    """Largest multiple of `align` <= cap that evenly divides round_up(total, align).

    Keeps the grid free of partial tiles (so the wrapper-side pads are no-ops
    whenever the problem size is already aligned) and minimizes grid steps.
    """
    total_a = _round_up(max(total, align), align)
    cap_a = max(align, (cap // align) * align)
    if total_a <= cap_a:
        return total_a
    for cand in range(cap_a, align - 1, -align):
        if total_a % cand == 0:
            return cand
    return cap_a


def _vmem_capacity_bytes():
    """Physical VMEM per TensorCore (128 MiB on v5e/v6e, 64 MiB on v7x)."""
    try:
        info = pltpu.get_tpu_info()
        cap = getattr(info, "vmem_capacity_bytes", None)
        if cap:
            return int(cap)
    except Exception:
        pass
    return 64 * 1024 * 1024  # conservative default (v7x per-TC)


@functools.lru_cache(maxsize=None)
def _single_buffer_supported():
    """Probe whether pipeline_mode=pl.Buffered(1) lowers on this jax/libtpu.

    Grid-invariant operands (constant index_map) don't need double buffering;
    single-buffering them halves their VMEM footprint.  Probed once, outside
    jit, so an unsupported combination degrades gracefully instead of failing
    the main kernel's compile.
    """
    def _k(x_ref, o_ref):
        o_ref[...] = x_ref[...] + 1.0

    try:
        x = jnp.zeros((8, 128), jnp.float32)
        out = pl.pallas_call(
            _k,
            out_shape=jax.ShapeDtypeStruct((8, 128), jnp.float32),
            grid=(2,),
            in_specs=[pl.BlockSpec((8, 128), lambda i: (0, 0),
                                   pipeline_mode=pl.Buffered(1))],
            out_specs=pl.BlockSpec((8, 128), lambda i: (0, 0)),
            compiler_params=pltpu.CompilerParams(
                dimension_semantics=("arbitrary",)),
        )(x)
        jax.block_until_ready(out)
        return True
    except Exception:
        return False


# ----------------------------------------------------------------------------
# Fused BYOL forward kernel.
# grid = (batch_tiles [parallel], k_tiles [arbitrary, reduction over D_in])
# ----------------------------------------------------------------------------
def _byol_kernel(
    x1_ref, x2_ref,
    wo1_ref, bo1_ref, wo2_ref, bo2_ref,        # online encoder
    wt1_ref, bt1_ref, wt2_ref, bt2_ref,        # target encoder
    wp1_ref, bp1_ref, wp2_ref, bp2_ref,        # predictor
    z1_ref, z2_ref, p1_ref, p2_ref,            # outputs
    h1_acc, h2_acc,                            # f32 VMEM accumulators
):
    k = pl.program_id(1)

    @pl.when(k == 0)
    def _init():
        h1_acc[...] = jnp.zeros_like(h1_acc)
        h2_acc[...] = jnp.zeros_like(h2_acc)

    # Layer-1 partial products for this K tile: bf16 operands, f32 accumulate.
    x1 = x1_ref[...].astype(jnp.bfloat16)
    x2 = x2_ref[...].astype(jnp.bfloat16)
    h1_acc[...] += jnp.dot(x1, wo1_ref[...], preferred_element_type=jnp.float32)
    h2_acc[...] += jnp.dot(x2, wt1_ref[...], preferred_element_type=jnp.float32)

    @pl.when(k == pl.num_programs(1) - 1)
    def _finalize():
        # Bias + ReLU in f32 (v5e-friendly); cast to bf16 only at MXU inputs.
        def head(h_acc, b1, w2, b2):
            h = jnp.maximum(h_acc + b1, 0.0)
            return jnp.dot(h.astype(jnp.bfloat16), w2,
                           preferred_element_type=jnp.float32) + b2

        def predictor(z):
            hp = jnp.maximum(
                jnp.dot(z.astype(jnp.bfloat16), wp1_ref[...],
                        preferred_element_type=jnp.float32) + bp1_ref[...], 0.0)
            return jnp.dot(hp.astype(jnp.bfloat16), wp2_ref[...],
                           preferred_element_type=jnp.float32) + bp2_ref[...]

        z1 = head(h1_acc[...], bo1_ref[...], wo2_ref[...], bo2_ref[...])
        z2 = head(h2_acc[...], bt1_ref[...], wt2_ref[...], bt2_ref[...])

        # No concatenate / value slices in the epilogue: two direct predictor
        # matmuls with direct stores into the output refs.
        z1_ref[...] = z1.astype(z1_ref.dtype)
        z2_ref[...] = z2.astype(z2_ref.dtype)
        p1_ref[...] = predictor(z1).astype(p1_ref.dtype)
        p2_ref[...] = predictor(z2).astype(p2_ref.dtype)


def _pad2d(a, rows, cols):
    pr, pc = rows - a.shape[0], cols - a.shape[1]
    if pr == 0 and pc == 0:
        return a
    return jnp.pad(a, ((0, pr), (0, pc)))


# ----------------------------------------------------------------------------
# Jitted implementation (all hardware-dependent config resolved statically).
# ----------------------------------------------------------------------------
@functools.partial(
    jax.jit,
    static_argnames=("tb", "tk", "vmem_limit_bytes", "single_buffer"))
def _byol_forward_impl(online_params, target_params, predictor_params, x1, x2,
                       *, tb, tk, vmem_limit_bytes, single_buffer):
    B = x1.shape[0]
    x1f = x1.reshape(B, -1)      # same as torch.flatten (NCHW); keep input dtype
    x2f = x2.reshape(B, -1)
    d_in = x1f.shape[1]

    wo1, bo1, wo2, bo2 = (online_params[n] for n in ("w1", "b1", "w2", "b2"))
    wt1, bt1, wt2, bt2 = (target_params[n] for n in ("w1", "b1", "w2", "b2"))
    wp1, bp1, wp2, bp2 = (predictor_params[n] for n in ("w1", "b1", "w2", "b2"))

    d_hid_enc = wo1.shape[1]
    d_proj = wo2.shape[1]
    d_hid_pred = wp1.shape[1]

    b_pad = _round_up(B, tb)
    k_pad = _round_up(d_in, tk)
    nb, nk = b_pad // tb, k_pad // tk

    # Zero-padding x columns / w1 rows contributes 0 to the accumulation.
    # With the tile picker these are no-ops whenever d_in / B are aligned.
    x1p = _pad2d(x1f, b_pad, k_pad)
    x2p = _pad2d(x2f, b_pad, k_pad)
    wo1p = _pad2d(wo1, k_pad, d_hid_enc)
    wt1p = _pad2d(wt1, k_pad, d_hid_enc)

    xmap = lambda i, k: (i, k)
    w1map = lambda i, k: (k, 0)
    cmap = lambda i, k: (0, 0)       # grid-invariant operands
    outmap = lambda i, k: (i, 0)

    # Grid-invariant operands: no double buffering (constant index_map), saves
    # several MiB of VMEM at real projector widths.
    inv = dict(pipeline_mode=pl.Buffered(1)) if single_buffer else {}

    in_specs = [
        pl.BlockSpec((tb, tk), xmap),                         # x1
        pl.BlockSpec((tb, tk), xmap),                         # x2
        pl.BlockSpec((tk, d_hid_enc), w1map),                 # wo1 (streamed)
        pl.BlockSpec((1, d_hid_enc), cmap, **inv),            # bo1
        pl.BlockSpec((d_hid_enc, d_proj), cmap, **inv),       # wo2
        pl.BlockSpec((1, d_proj), cmap, **inv),               # bo2
        pl.BlockSpec((tk, d_hid_enc), w1map),                 # wt1 (streamed)
        pl.BlockSpec((1, d_hid_enc), cmap, **inv),            # bt1
        pl.BlockSpec((d_hid_enc, d_proj), cmap, **inv),       # wt2
        pl.BlockSpec((1, d_proj), cmap, **inv),               # bt2
        pl.BlockSpec((d_proj, d_hid_pred), cmap, **inv),      # wp1
        pl.BlockSpec((1, d_hid_pred), cmap, **inv),           # bp1
        pl.BlockSpec((d_hid_pred, d_proj), cmap, **inv),      # wp2
        pl.BlockSpec((1, d_proj), cmap, **inv),               # bp2
    ]
    out_spec = pl.BlockSpec((tb, d_proj), outmap)
    out_shape = jax.ShapeDtypeStruct((b_pad, d_proj), jnp.float32)

    x_bytes = x1p.dtype.itemsize
    w_bytes = wo1.dtype.itemsize
    flops = (
        2 * b_pad * k_pad * d_hid_enc * 2          # two encoder layer-1 matmuls
        + 2 * b_pad * d_hid_enc * d_proj * 2       # two encoder layer-2 matmuls
        + 2 * (2 * b_pad) * d_proj * d_hid_pred    # predictor layer-1 (both branches)
        + 2 * (2 * b_pad) * d_hid_pred * d_proj    # predictor layer-2
    )
    bytes_accessed = (
        2 * b_pad * k_pad * x_bytes                           # x1, x2
        + nb * 2 * k_pad * d_hid_enc * w_bytes                # layer-1 weights (per batch tile)
        + 2 * d_hid_enc * d_proj * w_bytes                    # layer-2 weights
        + 2 * (d_proj * d_hid_pred + d_hid_pred * d_proj) * w_bytes  # predictor weights
        + 4 * b_pad * d_proj * 4                              # z1, z2, p1, p2 (f32)
    )

    z1p, z2p, p1p, p2p = pl.pallas_call(
        _byol_kernel,
        out_shape=(out_shape, out_shape, out_shape, out_shape),
        grid_spec=pltpu.PrefetchScalarGridSpec(
            num_scalar_prefetch=0,
            grid=(nb, nk),
            in_specs=in_specs,
            out_specs=[out_spec, out_spec, out_spec, out_spec],
            scratch_shapes=[
                pltpu.VMEM((tb, d_hid_enc), jnp.float32),
                pltpu.VMEM((tb, d_hid_enc), jnp.float32),
            ],
        ),
        compiler_params=pltpu.CompilerParams(
            # Batch tiles are independent -> parallel (megacore only engages
            # when nb >= 2, i.e. large B / compute-bound regime); the D_in
            # reduction is last and arbitrary (accumulator pattern).
            dimension_semantics=("parallel", "arbitrary"),
            vmem_limit_bytes=vmem_limit_bytes,
        ),
        cost_estimate=pl.CostEstimate(
            flops=flops, transcendentals=0, bytes_accessed=bytes_accessed),
    )(x1p, x2p,
      wo1p, bo1, wo2, bo2,
      wt1p, bt1, wt2, bt2,
      wp1, bp1, wp2, bp2)

    z1 = z1p[:B]
    # torch.no_grad()/detach semantics on the target branch.
    # TODO(synk): pallas_call has no VJP here; add a custom_vjp if this forward
    # is to be differentiated in training (stop_gradient marks intent only).
    z2 = jax.lax.stop_gradient(z2p[:B])
    p1 = p1p[:B]
    p2 = p2p[:B]
    return z1, z2, p1, p2


# ----------------------------------------------------------------------------
# Public wrapper: mirrors BYOL.forward -> (z1, z2, p1, p2).
# Resolves per-TPU-generation tiling / VMEM budget eagerly (outside jit).
# ----------------------------------------------------------------------------
def byol_forward(online_params, target_params, predictor_params, x1, x2,
                 *, tile_b=None, tile_k=None):
    B = x1.shape[0]
    d_in = 1
    for s in x1.shape[1:]:
        d_in *= int(s)
    d_hid_enc = online_params["w1"].shape[1]

    vmem_cap = _vmem_capacity_bytes()
    # Never request the full physical VMEM; leave headroom for the compiler.
    vmem_limit = int(vmem_cap * 0.85)

    # K tile: as large as the generation's VMEM allows (2048 on 128-MiB chips,
    # 1024 on 64-MiB v7x), preferring a value that divides D_in exactly so no
    # wrapper-side pad copy is needed.
    tk_cap = tile_k if tile_k is not None else (
        2048 if vmem_cap >= 96 * 1024 * 1024 else 1024)
    tk = _pick_tile(d_in, tk_cap, 128)

    # Batch tile: big enough that nb == 1 whenever the two f32 accumulators
    # (2 * tb * d_hid_enc * 4 B) fit a ~1/8-of-VMEM budget, capped at 256
    # (MXU-friendly M on v6e/v7x); multiple of 8 for f32 sublanes.
    acc_row_bytes = 2 * d_hid_enc * 4
    tb_budget = max(8, ((vmem_limit // 8) // acc_row_bytes) // 8 * 8)
    tb_cap = tile_b if tile_b is not None else max(8, min(256, tb_budget))
    tb = _pick_tile(B, tb_cap, 8)

    single_buffer = _single_buffer_supported()

    return _byol_forward_impl(
        online_params, target_params, predictor_params, x1, x2,
        tb=tb, tk=tk, vmem_limit_bytes=vmem_limit, single_buffer=single_buffer)


# ----------------------------------------------------------------------------
# update_target_network: training-time EMA of parameters (update_ema_jit).
# Pure elementwise -> plain JAX is optimal; no Pallas kernel needed.
# ----------------------------------------------------------------------------
def update_target_network(target_params, online_params, ema_decay=0.995):
    return jax.tree_util.tree_map(
        lambda t, o: (ema_decay * t.astype(jnp.float32)
                      + (1.0 - ema_decay) * o.astype(jnp.float32)).astype(t.dtype),
        target_params, online_params)


# ----------------------------------------------------------------------------
# Parameter construction (deterministic, in-script).  Weights in bf16 (MXU
# native operand dtype), biases in f32 (elementwise stays f32 in-kernel).
# ----------------------------------------------------------------------------
def make_mlp_params(key, d_in, d_hidden, d_out):
    k1, k2 = jax.random.split(key)
    s1 = 1.0 / float(d_in) ** 0.5
    s2 = 1.0 / float(d_hidden) ** 0.5
    return dict(
        w1=jax.random.uniform(k1, (d_in, d_hidden), jnp.float32, -s1, s1
                              ).astype(jnp.bfloat16),
        b1=jnp.zeros((1, d_hidden), jnp.float32),
        w2=jax.random.uniform(k2, (d_hidden, d_out), jnp.float32, -s2, s2
                              ).astype(jnp.bfloat16),
        b2=jnp.zeros((1, d_out), jnp.float32),
    )


# ----------------------------------------------------------------------------
# Pure-JAX reference (same bf16-operand / f32-accumulate recipe).
# ----------------------------------------------------------------------------
def ref_mlp(params, x):
    h = jnp.dot(x.astype(jnp.bfloat16), params["w1"],
                preferred_element_type=jnp.float32) + params["b1"]
    h = jnp.maximum(h, 0.0)
    return jnp.dot(h.astype(jnp.bfloat16), params["w2"],
                   preferred_element_type=jnp.float32) + params["b2"]


if __name__ == "__main__":
    B, C, H, W = 2, 4, 16, 16
    D_IN = C * H * W          # 1024
    ENC_HIDDEN = 256
    PROJ_DIM = 128
    PRED_HIDDEN = 128

    key = jax.random.PRNGKey(0)
    k_x1, k_x2, k_enc, k_pred = jax.random.split(key, 4)

    x1 = jax.random.normal(k_x1, (B, C, H, W), jnp.float32)
    x2 = jax.random.normal(k_x2, (B, C, H, W), jnp.float32)

    online_params = make_mlp_params(k_enc, D_IN, ENC_HIDDEN, PROJ_DIM)
    # target_network.load_state_dict(online_network.state_dict()) -> identical copy
    target_params = jax.tree_util.tree_map(lambda a: a.copy(), online_params)
    predictor_params = make_mlp_params(k_pred, PROJ_DIM, PRED_HIDDEN, PROJ_DIM)

    z1, z2, p1, p2 = byol_forward(
        online_params, target_params, predictor_params, x1, x2)
    jax.block_until_ready((z1, z2, p1, p2))

    # correctness check against a pure-JAX reference
    x1f = x1.reshape(B, -1)
    x2f = x2.reshape(B, -1)
    z1_ref = ref_mlp(online_params, x1f)
    z2_ref = ref_mlp(target_params, x2f)
    p1_ref = ref_mlp(predictor_params, z1_ref)
    p2_ref = ref_mlp(predictor_params, z2_ref)

    for got, want in ((z1, z1_ref), (z2, z2_ref), (p1, p1_ref), (p2, p2_ref)):
        assert got.shape == want.shape
        assert jnp.allclose(got, want, atol=1e-2, rtol=1e-2), "mismatch vs reference"

    print("KERNEL_OK")
</pallas_src>

<mosaic_0001>
module attributes {stable_mosaic.version = 11 : i64} {
  func.func @_k(%arg0: i32, %arg1: memref<8x128xf32, #tpu.memory_space<vmem>>, %arg2: memref<8x128xf32, #tpu.memory_space<vmem>>) attributes {dimension_semantics = [#tpu.dimension_semantics<arbitrary>], iteration_bounds = array<i64: 2>, scalar_prefetch = 0 : i64, scratch_operands = 0 : i64, tpu.core_type = #tpu.core_type<tc>, window_params = [{pipeline_mode = #tpu.pipeline_mode<synchronous>, transform_indices = @transform_0, window_bounds = array<i64: 8, 128>}, {pipeline_mode = #tpu.pipeline_mode<synchronous>, transform_indices = @transform_1, window_bounds = array<i64: 8, 128>}]} {
    %c0 = arith.constant 0 : index
    %c0_0 = arith.constant 0 : index
    %0 = vector.load %arg1[%c0, %c0_0] : memref<8x128xf32, #tpu.memory_space<vmem>>, vector<8x128xf32>
    %cst = arith.constant 1.000000e+00 : f32
    %1 = vector.broadcast %cst : f32 to vector<8x128xf32>
    %2 = arith.addf %0, %1 : vector<8x128xf32>
    %c0_1 = arith.constant 0 : index
    %c0_2 = arith.constant 0 : index
    %3 = vector.load %arg2[%c0_1, %c0_2] : memref<8x128xf32, #tpu.memory_space<vmem>>, vector<8x128xf32>
    tpu.vector_store %arg2[%c0_1, %c0_2], %2 {strides = array<i32>} : memref<8x128xf32, #tpu.memory_space<vmem>>, vector<8x128xf32>,
    return
  }
  func.func @transform_0(%arg0: i32) -> (i32, i32) {
    %c0_i32 = arith.constant 0 : i32
    %c0_i32_0 = arith.constant 0 : i32
    %c0_i32_1 = arith.constant 0 : i32
    return %c0_i32, %c0_i32_0 : i32, i32
  }
  func.func @transform_1(%arg0: i32) -> (i32, i32) {
    %c0_i32 = arith.constant 0 : i32
    %c0_i32_0 = arith.constant 0 : i32
    %c0_i32_1 = arith.constant 0 : i32
    return %c0_i32, %c0_i32_0 : i32, i32
  }
}

module attributes {stable_mosaic.version = 11 : i64} {
  func.func @_byol_kernel(%arg0: i32, %arg1: i32, %arg2: memref<8x1024xf32, #tpu.memory_space<vmem>>, %arg3: memref<8x1024xf32, #tpu.memory_space<vmem>>, %arg4: memref<1024x256xbf16, #tpu.memory_space<vmem>>, %arg5: memref<1x256xf32, #tpu.memory_space<vmem>>, %arg6: memref<256x128xbf16, #tpu.memory_space<vmem>>, %arg7: memref<1x128xf32, #tpu.memory_space<vmem>>, %arg8: memref<1024x256xbf16, #tpu.memory_space<vmem>>, %arg9: memref<1x256xf32, #tpu.memory_space<vmem>>, %arg10: memref<256x128xbf16, #tpu.memory_space<vmem>>, %arg11: memref<1x128xf32, #tpu.memory_space<vmem>>, %arg12: memref<128x128xbf16, #tpu.memory_space<vmem>>, %arg13: memref<1x128xf32, #tpu.memory_space<vmem>>, %arg14: memref<128x128xbf16, #tpu.memory_space<vmem>>, %arg15: memref<1x128xf32, #tpu.memory_space<vmem>>, %arg16: memref<8x128xf32, #tpu.memory_space<vmem>>, %arg17: memref<8x128xf32, #tpu.memory_space<vmem>>, %arg18: memref<8x128xf32, #tpu.memory_space<vmem>>, %arg19: memref<8x128xf32, #tpu.memory_space<vmem>>, %arg20: memref<8x256xf32, #tpu.memory_space<vmem>>, %arg21: memref<8x256xf32, #tpu.memory_space<vmem>>) attributes {dimension_semantics = [#tpu.dimension_semantics<parallel>, #tpu.dimension_semantics<arbitrary>], iteration_bounds = array<i64: 1, 1>, scalar_prefetch = 0 : i64, scratch_operands = 2 : i64, tpu.core_type = #tpu.core_type<tc>, window_params = [{transform_indices = @transform_0, window_bounds = array<i64: 8, 1024>}, {transform_indices = @transform_1, window_bounds = array<i64: 8, 1024>}, {transform_indices = @transform_2, window_bounds = array<i64: 1024, 256>}, {pipeline_mode = #tpu.pipeline_mode<synchronous>, transform_indices = @transform_3, window_bounds = array<i64: 1, 256>}, {pipeline_mode = #tpu.pipeline_mode<synchronous>, transform_indices = @transform_4, window_bounds = array<i64: 256, 128>}, {pipeline_mode = #tpu.pipeline_mode<synchronous>, transform_indices = @transform_5, window_bounds = array<i64: 1, 128>}, {transform_indices = @transform_6, window_bounds = array<i64: 1024, 256>}, {pipeline_mode = #tpu.pipeline_mode<synchronous>, transform_indices = @transform_7, window_bounds = array<i64: 1, 256>}, {pipeline_mode = #tpu.pipeline_mode<synchronous>, transform_indices = @transform_8, window_bounds = array<i64: 256, 128>}, {pipeline_mode = #tpu.pipeline_mode<synchronous>, transform_indices = @transform_9, window_bounds = array<i64: 1, 128>}, {pipeline_mode = #tpu.pipeline_mode<synchronous>, transform_indices = @transform_10, window_bounds = array<i64: 128, 128>}, {pipeline_mode = #tpu.pipeline_mode<synchronous>, transform_indices = @transform_11, window_bounds = array<i64: 1, 128>}, {pipeline_mode = #tpu.pipeline_mode<synchronous>, transform_indices = @transform_12, window_bounds = array<i64: 128, 128>}, {pipeline_mode = #tpu.pipeline_mode<synchronous>, transform_indices = @transform_13, window_bounds = array<i64: 1, 128>}, {transform_indices = @transform_14, window_bounds = array<i64: 8, 128>}, {transform_indices = @transform_15, window_bounds = array<i64: 8, 128>}, {transform_indices = @transform_16, window_bounds = array<i64: 8, 128>}, {transform_indices = @transform_17, window_bounds = array<i64: 8, 128>}]} {
    %c0_i32 = arith.constant 0 : i32
    %0 = arith.cmpi eq, %arg1, %c0_i32 : i32
    %1 = arith.extui %0 : i1 to i32
    %c0_i32_0 = arith.constant 0 : i32
    %2 = arith.cmpi ne, %1, %c0_i32_0 : i32
    scf.if %2 {
      %cst_19 = arith.constant 0.000000e+00 : f32
      %20 = vector.broadcast %cst_19 : f32 to vector<8x256xf32>
      %c0_20 = arith.constant 0 : index
      %c0_21 = arith.constant 0 : index
      %21 = vector.load %arg20[%c0_20, %c0_21] : memref<8x256xf32, #tpu.memory_space<vmem>>, vector<8x256xf32>
      tpu.vector_store %arg20[%c0_20, %c0_21], %20 {strides = array<i32>} : memref<8x256xf32, #tpu.memory_space<vmem>>, vector<8x256xf32>,
      %cst_22 = arith.constant 0.000000e+00 : f32
      %22 = vector.broadcast %cst_22 : f32 to vector<8x256xf32>
      %c0_23 = arith.constant 0 : index
      %c0_24 = arith.constant 0 : index
      %23 = vector.load %arg21[%c0_23, %c0_24] : memref<8x256xf32, #tpu.memory_space<vmem>>, vector<8x256xf32>
      tpu.vector_store %arg21[%c0_23, %c0_24], %22 {strides = array<i32>} : memref<8x256xf32, #tpu.memory_space<vmem>>, vector<8x256xf32>,
    } else {
    }
    %c0 = arith.constant 0 : index
    %c0_1 = arith.constant 0 : index
    %3 = vector.load %arg2[%c0, %c0_1] : memref<8x1024xf32, #tpu.memory_space<vmem>>, vector<8x1024xf32>
    %4 = arith.truncf %3 : vector<8x1024xf32> to vector<8x1024xbf16>
    %c0_2 = arith.constant 0 : index
    %c0_3 = arith.constant 0 : index
    %5 = vector.load %arg3[%c0_2, %c0_3] : memref<8x1024xf32, #tpu.memory_space<vmem>>, vector<8x1024xf32>
    %6 = arith.truncf %5 : vector<8x1024xf32> to vector<8x1024xbf16>
    %c0_4 = arith.constant 0 : index
    %c0_5 = arith.constant 0 : index
    %7 = vector.load %arg20[%c0_4, %c0_5] : memref<8x256xf32, #tpu.memory_space<vmem>>, vector<8x256xf32>
    %c0_6 = arith.constant 0 : index
    %c0_7 = arith.constant 0 : index
    %8 = vector.load %arg4[%c0_6, %c0_7] : memref<1024x256xbf16, #tpu.memory_space<vmem>>, vector<1024x256xbf16>
    %cst = arith.constant dense<0.000000e+00> : vector<8x256xf32>
    %9 = tpu.matmul %4, %8, %cst {dimension_numbers = #tpu.dot_dimension_numbers<[1], [0], [0], [1], [0, 0, 1, 1], [], []>} : vector<8x1024xbf16>, vector<1024x256xbf16>, vector<8x256xf32> -> vector<8x256xf32>
    %10 = arith.addf %7, %9 : vector<8x256xf32>
    %c0_8 = arith.constant 0 : index
    %c0_9 = arith.constant 0 : index
    %11 = vector.load %arg20[%c0_8, %c0_9] : memref<8x256xf32, #tpu.memory_space<vmem>>, vector<8x256xf32>
    tpu.vector_store %arg20[%c0_8, %c0_9], %10 {strides = array<i32>} : memref<8x256xf32, #tpu.memory_space<vmem>>, vector<8x256xf32>,
    %c0_10 = arith.constant 0 : index
    %c0_11 = arith.constant 0 : index
    %12 = vector.load %arg21[%c0_10, %c0_11] : memref<8x256xf32, #tpu.memory_space<vmem>>, vector<8x256xf32>
    %c0_12 = arith.constant 0 : index
    %c0_13 = arith.constant 0 : index
    %13 = vector.load %arg8[%c0_12, %c0_13] : memref<1024x256xbf16, #tpu.memory_space<vmem>>, vector<1024x256xbf16>
    %cst_14 = arith.constant dense<0.000000e+00> : vector<8x256xf32>
    %14 = tpu.matmul %6, %13, %cst_14 {dimension_numbers = #tpu.dot_dimension_numbers<[1], [0], [0], [1], [0, 0, 1, 1], [], []>} : vector<8x1024xbf16>, vector<1024x256xbf16>, vector<8x256xf32> -> vector<8x256xf32>
    %15 = arith.addf %12, %14 : vector<8x256xf32>
    %c0_15 = arith.constant 0 : index
    %c0_16 = arith.constant 0 : index
    %16 = vector.load %arg21[%c0_15, %c0_16] : memref<8x256xf32, #tpu.memory_space<vmem>>, vector<8x256xf32>
    tpu.vector_store %arg21[%c0_15, %c0_16], %15 {strides = array<i32>} : memref<8x256xf32, #tpu.memory_space<vmem>>, vector<8x256xf32>,
    %c0_i32_17 = arith.constant 0 : i32
    %17 = arith.cmpi eq, %arg1, %c0_i32_17 : i32
    %18 = arith.extui %17 : i1 to i32
    %c0_i32_18 = arith.constant 0 : i32
    %19 = arith.cmpi ne, %18, %c0_i32_18 : i32
    scf.if %19 {
      %c0_19 = arith.constant 0 : index
      %c0_20 = arith.constant 0 : index
      %20 = vector.load %arg20[%c0_19, %c0_20] : memref<8x256xf32, #tpu.memory_space<vmem>>, vector<8x256xf32>
      %c0_21 = arith.constant 0 : index
      %c0_22 = arith.constant 0 : index
      %21 = vector.load %arg5[%c0_21, %c0_22] : memref<1x256xf32, #tpu.memory_space<vmem>>, vector<1x256xf32>
      %c0_23 = arith.constant 0 : index
      %c0_24 = arith.constant 0 : index
      %22 = vector.load %arg6[%c0_23, %c0_24] : memref<256x128xbf16, #tpu.memory_space<vmem>>, vector<256x128xbf16>
      %c0_25 = arith.constant 0 : index
      %c0_26 = arith.constant 0 : index
      %23 = vector.load %arg7[%c0_25, %c0_26] : memref<1x128xf32, #tpu.memory_space<vmem>>, vector<1x128xf32>
      %24 = vector.broadcast %21 : vector<1x256xf32> to vector<8x256xf32>
      %25 = arith.addf %20, %24 : vector<8x256xf32>
      %cst_27 = arith.constant 0.000000e+00 : f32
      %26 = vector.broadcast %cst_27 : f32 to vector<8x256xf32>
      %27 = arith.maximumf %25, %26 : vector<8x256xf32>
      %28 = arith.truncf %27 : vector<8x256xf32> to vector<8x256xbf16>
      %cst_28 = arith.constant dense<0.000000e+00> : vector<8x128xf32>
      %29 = tpu.matmul %28, %22, %cst_28 {dimension_numbers = #tpu.dot_dimension_numbers<[1], [0], [0], [1], [0, 0, 1, 1], [], []>} : vector<8x256xbf16>, vector<256x128xbf16>, vector<8x128xf32> -> vector<8x128xf32>
      %30 = vector.broadcast %23 : vector<1x128xf32> to vector<8x128xf32>
      %31 = arith.addf %29, %30 : vector<8x128xf32>
      %c0_29 = arith.constant 0 : index
      %c0_30 = arith.constant 0 : index
      %32 = vector.load %arg21[%c0_29, %c0_30] : memref<8x256xf32, #tpu.memory_space<vmem>>, vector<8x256xf32>
      %c0_31 = arith.constant 0 : index
      %c0_32 = arith.constant 0 : index
      %33 = vector.load %arg9[%c0_31, %c0_32] : memref<1x256xf32, #tpu.memory_space<vmem>>, vector<1x256xf32>
      %c0_33 = arith.constant 0 : index
      %c0_34 = arith.constant 0 : index
      %34 = vector.load %arg10[%c0_33, %c0_34] : memref<256x128xbf16, #tpu.memory_space<vmem>>, vector<256x128xbf16>
      %c0_35 = arith.constant 0 : index
      %c0_36 = arith.constant 0 : index
      %35 = vector.load %arg11[%c0_35, %c0_36] : memref<1x128xf32, #tpu.memory_space<vmem>>, vector<1x128xf32>
      %36 = vector.broadcast %33 : vector<1x256xf32> to vector<8x256xf32>
      %37 = arith.addf %32, %36 : vector<8x256xf32>
      %cst_37 = arith.constant 0.000000e+00 : f32
      %38 = vector.broadcast %cst_37 : f32 to vector<8x256xf32>
      %39 = arith.maximumf %37, %38 : vector<8x256xf32>
      %40 = arith.truncf %39 : vector<8x256xf32> to vector<8x256xbf16>
      %cst_38 = arith.constant dense<0.000000e+00> : vector<8x128xf32>
      %41 = tpu.matmul %40, %34, %cst_38 {dimension_numbers = #tpu.dot_dimension_numbers<[1], [0], [0], [1], [0, 0, 1, 1], [], []>} : vector<8x256xbf16>, vector<256x128xbf16>, vector<8x128xf32> -> vector<8x128xf32>
      %42 = vector.broadcast %35 : vector<1x128xf32> to vector<8x128xf32>
      %43 = arith.addf %41, %42 : vector<8x128xf32>
      %c0_39 = arith.constant 0 : index
      %c0_40 = arith.constant 0 : index
      %44 = vector.load %arg16[%c0_39, %c0_40] : memref<8x128xf32, #tpu.memory_space<vmem>>, vector<8x128xf32>
      tpu.vector_store %arg16[%c0_39, %c0_40], %31 {strides = array<i32>} : memref<8x128xf32, #tpu.memory_space<vmem>>, vector<8x128xf32>,
      %c0_41 = arith.constant 0 : index
      %c0_42 = arith.constant 0 : index
      %45 = vector.load %arg17[%c0_41, %c0_42] : memref<8x128xf32, #tpu.memory_space<vmem>>, vector<8x128xf32>
      tpu.vector_store %arg17[%c0_41, %c0_42], %43 {strides = array<i32>} : memref<8x128xf32, #tpu.memory_space<vmem>>, vector<8x128xf32>,
      %46 = arith.truncf %31 : vector<8x128xf32> to vector<8x128xbf16>
      %c0_43 = arith.constant 0 : index
      %c0_44 = arith.constant 0 : index
      %47 = vector.load %arg12[%c0_43, %c0_44] : memref<128x128xbf16, #tpu.memory_space<vmem>>, vector<128x128xbf16>
      %cst_45 = arith.constant dense<0.000000e+00> : vector<8x128xf32>
      %48 = tpu.matmul %46, %47, %cst_45 {dimension_numbers = #tpu.dot_dimension_numbers<[1], [0], [0], [1], [0, 0, 1, 1], [], []>} : vector<8x128xbf16>, vector<128x128xbf16>, vector<8x128xf32> -> vector<8x128xf32>
      %c0_46 = arith.constant 0 : index
      %c0_47 = arith.constant 0 : index
      %49 = vector.load %arg13[%c0_46, %c0_47] : memref<1x128xf32, #tpu.memory_space<vmem>>, vector<1x128xf32>
      %50 = vector.broadcast %49 : vector<1x128xf32> to vector<8x128xf32>
      %51 = arith.addf %48, %50 : vector<8x128xf32>
      %cst_48 = arith.constant 0.000000e+00 : f32
      %52 = vector.broadcast %cst_48 : f32 to vector<8x128xf32>
      %53 = arith.maximumf %51, %52 : vector<8x128xf32>
      %54 = arith.truncf %53 : vector<8x128xf32> to vector<8x128xbf16>
      %c0_49 = arith.constant 0 : index
      %c0_50 = arith.constant 0 : index
      %55 = vector.load %arg14[%c0_49, %c0_50] : memref<128x128xbf16, #tpu.memory_space<vmem>>, vector<128x128xbf16>
      %cst_51 = arith.constant dense<0.000000e+00> : vector<8x128xf32>
      %56 = tpu.matmul %54, %55, %cst_51 {dimension_numbers = #tpu.dot_dimension_numbers<[1], [0], [0], [1], [0, 0, 1, 1], [], []>} : vector<8x128xbf16>, vector<128x128xbf16>, vector<8x128xf32> -> vector<8x128xf32>
      %c0_52 = arith.constant 0 : index
      %c0_53 = arith.constant 0 : index
      %57 = vector.load %arg15[%c0_52, %c0_53] : memref<1x128xf32, #tpu.memory_space<vmem>>, vector<1x128xf32>
      %58 = vector.broadcast %57 : vector<1x128xf32> to vector<8x128xf32>
      %59 = arith.addf %56, %58 : vector<8x128xf32>
      %c0_54 = arith.constant 0 : index
      %c0_55 = arith.constant 0 : index
      %60 = vector.load %arg18[%c0_54, %c0_55] : memref<8x128xf32, #tpu.memory_space<vmem>>, vector<8x128xf32>
      tpu.vector_store %arg18[%c0_54, %c0_55], %59 {strides = array<i32>} : memref<8x128xf32, #tpu.memory_space<vmem>>, vector<8x128xf32>,
      %61 = arith.truncf %43 : vector<8x128xf32> to vector<8x128xbf16>
      %c0_56 = arith.constant 0 : index
      %c0_57 = arith.constant 0 : index
      %62 = vector.load %arg12[%c0_56, %c0_57] : memref<128x128xbf16, #tpu.memory_space<vmem>>, vector<128x128xbf16>
      %cst_58 = arith.constant dense<0.000000e+00> : vector<8x128xf32>
      %63 = tpu.matmul %61, %62, %cst_58 {dimension_numbers = #tpu.dot_dimension_numbers<[1], [0], [0], [1], [0, 0, 1, 1], [], []>} : vector<8x128xbf16>, vector<128x128xbf16>, vector<8x128xf32> -> vector<8x128xf32>
      %c0_59 = arith.constant 0 : index
      %c0_60 = arith.constant 0 : index
      %64 = vector.load %arg13[%c0_59, %c0_60] : memref<1x128xf32, #tpu.memory_space<vmem>>, vector<1x128xf32>
      %65 = vector.broadcast %64 : vector<1x128xf32> to vector<8x128xf32>
      %66 = arith.addf %63, %65 : vector<8x128xf32>
      %cst_61 = arith.constant 0.000000e+00 : f32
      %67 = vector.broadcast %cst_61 : f32 to vector<8x128xf32>
      %68 = arith.maximumf %66, %67 : vector<8x128xf32>
      %69 = arith.truncf %68 : vector<8x128xf32> to vector<8x128xbf16>
      %c0_62 = arith.constant 0 : index
      %c0_63 = arith.constant 0 : index
      %70 = vector.load %arg14[%c0_62, %c0_63] : memref<128x128xbf16, #tpu.memory_space<vmem>>, vector<128x128xbf16>
      %cst_64 = arith.constant dense<0.000000e+00> : vector<8x128xf32>
      %71 = tpu.matmul %69, %70, %cst_64 {dimension_numbers = #tpu.dot_dimension_numbers<[1], [0], [0], [1], [0, 0, 1, 1], [], []>} : vector<8x128xbf16>, vector<128x128xbf16>, vector<8x128xf32> -> vector<8x128xf32>
      %c0_65 = arith.constant 0 : index
      %c0_66 = arith.constant 0 : index
      %72 = vector.load %arg15[%c0_65, %c0_66] : memref<1x128xf32, #tpu.memory_space<vmem>>, vector<1x128xf32>
      %73 = vector.broadcast %72 : vector<1x128xf32> to vector<8x128xf32>
      %74 = arith.addf %71, %73 : vector<8x128xf32>
      %c0_67 = arith.constant 0 : index
      %c0_68 = arith.constant 0 : index
      %75 = vector.load %arg19[%c0_67, %c0_68] : memref<8x128xf32, #tpu.memory_space<vmem>>, vector<8x128xf32>
      tpu.vector_store %arg19[%c0_67, %c0_68], %74 {strides = array<i32>} : memref<8x128xf32, #tpu.memory_space<vmem>>, vector<8x128xf32>,
    } else {
    }
    return
  }
  func.func @transform_0(%arg0: i32, %arg1: i32) -> (i32, i32) {
    %c0_i32 = arith.constant 0 : i32
    return %arg0, %arg1 : i32, i32
  }
  func.func @transform_1(%arg0: i32, %arg1: i32) -> (i32, i32) {
    %c0_i32 = arith.constant 0 : i32
    return %arg0, %arg1 : i32, i32
  }
  func.func @transform_2(%arg0: i32, %arg1: i32) -> (i32, i32) {
    %c0_i32 = arith.constant 0 : i32
    %c0_i32_0 = arith.constant 0 : i32
    return %arg1, %c0_i32 : i32, i32
  }
  func.func @transform_3(%arg0: i32, %arg1: i32) -> (i32, i32) {
    %c0_i32 = arith.constant 0 : i32
    %c0_i32_0 = arith.constant 0 : i32
    %c0_i32_1 = arith.constant 0 : i32
    return %c0_i32, %c0_i32_0 : i32, i32
  }
  func.func @transform_4(%arg0: i32, %arg1: i32) -> (i32, i32) {
    %c0_i32 = arith.constant 0 : i32
    %c0_i32_0 = arith.constant 0 : i32
    %c0_i32_1 = arith.constant 0 : i32
    return %c0_i32, %c0_i32_0 : i32, i32
  }
  func.func @transform_5(%arg0: i32, %arg1: i32) -> (i32, i32) {
    %c0_i32 = arith.constant 0 : i32
    %c0_i32_0 = arith.constant 0 : i32
    %c0_i32_1 = arith.constant 0 : i32
    return %c0_i32, %c0_i32_0 : i32, i32
  }
  func.func @transform_6(%arg0: i32, %arg1: i32) -> (i32, i32) {
    %c0_i32 = arith.constant 0 : i32
    %c0_i32_0 = arith.constant 0 : i32
    return %arg1, %c0_i32 : i32, i32
  }
  func.func @transform_7(%arg0: i32, %arg1: i32) -> (i32, i32) {
    %c0_i32 = arith.constant 0 : i32
    %c0_i32_0 = arith.constant 0 : i32
    %c0_i32_1 = arith.constant 0 : i32
    return %c0_i32, %c0_i32_0 : i32, i32
  }
  func.func @transform_8(%arg0: i32, %arg1: i32) -> (i32, i32) {
    %c0_i32 = arith.constant 0 : i32
    %c0_i32_0 = arith.constant 0 : i32
    %c0_i32_1 = arith.constant 0 : i32
    return %c0_i32, %c0_i32_0 : i32, i32
  }
  func.func @transform_9(%arg0: i32, %arg1: i32) -> (i32, i32) {
    %c0_i32 = arith.constant 0 : i32
    %c0_i32_0 = arith.constant 0 : i32
    %c0_i32_1 = arith.constant 0 : i32
    return %c0_i32, %c0_i32_0 : i32, i32
  }
  func.func @transform_10(%arg0: i32, %arg1: i32) -> (i32, i32) {
    %c0_i32 = arith.constant 0 : i32
    %c0_i32_0 = arith.constant 0 : i32
    %c0_i32_1 = arith.constant 0 : i32
    return %c0_i32, %c0_i32_0 : i32, i32
  }
  func.func @transform_11(%arg0: i32, %arg1: i32) -> (i32, i32) {
    %c0_i32 = arith.constant 0 : i32
    %c0_i32_0 = arith.constant 0 : i32
    %c0_i32_1 = arith.constant 0 : i32
    return %c0_i32, %c0_i32_0 : i32, i32
  }
  func.func @transform_12(%arg0: i32, %arg1: i32) -> (i32, i32) {
    %c0_i32 = arith.constant 0 : i32
    %c0_i32_0 = arith.constant 0 : i32
    %c0_i32_1 = arith.constant 0 : i32
    return %c0_i32, %c0_i32_0 : i32, i32
  }
  func.func @transform_13(%arg0: i32, %arg1: i32) -> (i32, i32) {
    %c0_i32 = arith.constant 0 : i32
    %c0_i32_0 = arith.constant 0 : i32
    %c0_i32_1 = arith.constant 0 : i32
    return %c0_i32, %c0_i32_0 : i32, i32
  }
  func.func @transform_14(%arg0: i32, %arg1: i32) -> (i32, i32) {
    %c0_i32 = arith.constant 0 : i32
    %c0_i32_0 = arith.constant 0 : i32
    return %arg0, %c0_i32 : i32, i32
  }
  func.func @transform_15(%arg0: i32, %arg1: i32) -> (i32, i32) {
    %c0_i32 = arith.constant 0 : i32
    %c0_i32_0 = arith.constant 0 : i32
    return %arg0, %c0_i32 : i32, i32
  }
  func.func @transform_16(%arg0: i32, %arg1: i32) -> (i32, i32) {
    %c0_i32 = arith.constant 0 : i32
    %c0_i32_0 = arith.constant 0 : i32
    return %arg0, %c0_i32 : i32, i32
  }
  func.func @transform_17(%arg0: i32, %arg1: i32) -> (i32, i32) {
    %c0_i32 = arith.constant 0 : i32
    %c0_i32_0 = arith.constant 0 : i32
    return %arg0, %c0_i32 : i32, i32
  }
}

</mosaic_0001>

<bundles_post_ra>
// kernel: tpu_custom_call.1
= control target key start
LH: loop header
LB: loop body
LE: loop exit
PB: predicated region body
PF: predicated region fallthrough
CT: control target
= control target key end

     0   :  { %6 = vsyncpa [#allocation3], 0  ;;  %s305_s0 = inlined_call_operand.hbm [shape: f32[8,128], index: 0, kind: input, shape index: {}]   ;;  %s306_s1 = inlined_call_operand.hbm [shape: f32[8,128], index: 1, kind: output, shape index: {}]  }
   0x1   :  { %7 = vsyncpa [#allocation4], 0  ;;  %s258_s6 = smov 0  }
   0x2 LB: > { %s145_s7 = sadd.s32 4294967295, %s244_s6   ;;  %p146_p0 = scmp.ge.s32.totalorder %s244_s6, 1  ;;  %s244_s6 = sphi %s258_s6, %s13_s6  }
   0x3   : > { %p60_p1 = scmp.lt.s32.totalorder %s244_s6, 3  ;;  %p270_p3 = scmp.eq.s32.totalorder %s145_s7, 0 }
   0x4   : > { %s246_s10 = smov [#allocation2]  }
   0x5   : > { %p266_p2 = pnand %p146_p0, %p60_p1  ;;  %s73_s11 = sshll.u32 %s246_s10, 4  ;;  %s74_s11 = int_to_ptr.vmem [resolvable:$true] %s73_s11 }
   0x6   : > { %s191_s12 = scalar_lea.vmem %s74_s11, 128  ;;  %p199_p10 = scmp.lt.s32.totalorder %s74_s11, %s74_s11 }
   0x7   : > { %p162_p4 = pneg %p266_p2  ;;  %p192_p7 = scmp.ne.s32.totalorder %s74_s11, %s191_s12 }
   0x8   : > { %p200_p11 = scmp.lt.s32.totalorder %s191_s12, %s191_s12 }
   0x9   : > { %p163_p5 = pnand %p270_p3, %p162_p4 }
   0xa   : > { %p201_p12 = por %p200_p11, %p199_p10 }
   0xb   : > { %p182_p6 = pneg %p163_p5 }
   0xd   : > { %p194_p8 = pnand %p192_p7, %p182_p6 }
   0xf   : > { %p195_p9 = pneg %p194_p8 }
  0x11   : > { %p202_p13 = pnand %p201_p12, %p195_p9 }
  0x13   : > { %205 = shalt.err (!%p202_p13)
}
  0x14   : > { %165 = dma.hbm_to_vmem [thread:$0]  (!%p163_p5), %s305_s0, 128, %s74_s11, [#allocation3]  }
  0x15   : > { %86 = sbr.rel (%p266_p2) target bundleno = 42 (0x2a), region = 24 }
  0x1a   : > { %235 = dma.done.wait (%p270_p3), [#allocation3], 128  }
  0x1b   : > { %237 = vsyncadd (%p270_p3), [#allocation3], 4294967168  ;;  %s247_s15 = smov [#allocation5]   ;;  %v96_v0 = vld [vmem:[#allocation2] sm:$0xff]  ;;  %p287_p0 = scmp.eq.s32.totalorder %s145_s7, 1 }
  0x1c   : > { %s106_s16 = sshll.u32 %s247_s15, 4  ;;  %v97_v1 = vadd.f32 1.0, %v96_v0  ;;  %s107_s16 = int_to_ptr.vmem [resolvable:$true] %s106_s16 }
  0x1d   : > { %s206_s18 = scalar_lea.vmem %s107_s16, 128  ;;  %p213_p5 = scmp.lt.s32.totalorder %s107_s16, %s107_s16 }
  0x1e   : > { %98 = vst [vmem:[#allocation5] sm:$0xff] %v97_v1  ;;  %p207_p1 = scmp.ne.s32.totalorder %s107_s16, %s206_s18  ;;  %p214_p6 = scmp.lt.s32.totalorder %s206_s18, %s206_s18 }
  0x20   : > { %p208_p2 = pnand %p207_p1, %p287_p0  ;;  %p215_p7 = por %p214_p6, %p213_p5 }
  0x22   : > { %p209_p4 = pneg %p208_p2 }
  0x24   : > { %p216_p3 = pnand %p215_p7, %p209_p4 }
  0x26   : > { %219 = shalt.err (!%p216_p3)
}
  0x27   : > { %159 = dma.vmem_to_hbm [thread:$0]  (%p287_p0), %s107_s16, 128, %s306_s1, [#allocation4]  }
  0x28   : > { %239 = dma.done.wait (%p287_p0), [#allocation4], 128  }
  0x29   : > { %241 = vsyncadd (%p287_p0), [#allocation4], 4294967168 }
  0x2a PF: > { %s13_s6 = sadd.s32 1, %s244_s6  }
  0x2b   : > { %p10_p8 = scmp.ge.s32.totalorder %s13_s6, 4  }
  0x2d   :  { %12 = sbr.rel (!%p10_p8) target bundleno = 2 (0x2), region = 53 }
  0x32   :  { %119 = vsyncpa [#allocation3], 1 }
  0x33   :  { %121 = vsyncpa [#allocation3 + $0x1], 1 }
  0x34   :  { %122 = vsyncpa [#allocation4], 1 }
  0x35   :  { %124 = vsyncpa [#allocation4 + $0x1], 1 }

// kernel: _byol_forward_impl.1
= control target key start
LH: loop header
LB: loop body
LE: loop exit
PB: predicated region body
PF: predicated region fallthrough
CT: control target
= control target key end

     0   :  { %s4266_s0 = inlined_call_operand.vmem [shape: f32[8,1024], index: 0, kind: input, shape index: {}]   ;;  %s4267_s1 = inlined_call_operand.vmem [shape: f32[8,1024], index: 1, kind: input, shape index: {}]   ;;  %s4268_s2 = inlined_call_operand.hbm [shape: bf16[1024,256], index: 2, kind: input, shape index: {}]   ;;  %s4269_s3 = inlined_call_operand.vmem [shape: f32[1,256], index: 3, kind: input, shape index: {}]   ;;  %s4270_s4 = inlined_call_operand.vmem [shape: bf16[256,128], index: 4, kind: input, shape index: {}]   ;;  %s4271_s5 = inlined_call_operand.vmem [shape: f32[1,128], index: 5, kind: input, shape index: {}]   ;;  %s4272_s6 = inlined_call_operand.hbm [shape: bf16[1024,256], index: 6, kind: input, shape index: {}]   ;;  %s4273_s7 = inlined_call_operand.vmem [shape: f32[1,256], index: 7, kind: input, shape index: {}]   ;;  %s4274_s8 = inlined_call_operand.vmem [shape: bf16[256,128], index: 8, kind: input, shape index: {}]   ;;  %s4275_s9 = inlined_call_operand.vmem [shape: f32[1,128], index: 9, kind: input, shape index: {}]   ;;  %s4276_s10 = inlined_call_operand.vmem [shape: bf16[128,128], index: 10, kind: input, shape index: {}]   ;;  %s4277_s11 = inlined_call_operand.vmem [shape: f32[1,128], index: 11, kind: input, shape index: {}]   ;;  %s4278_s12 = inlined_call_operand.hbm [shape: bf16[128,128], index: 12, kind: input, shape index: {}]   ;;  %s4279_s13 = inlined_call_operand.vmem [shape: f32[1,128], index: 13, kind: input, shape index: {}]   ;;  %s4280_s14 = inlined_call_operand.vmem [shape: f32[8,128], index: 14, kind: output, shape index: {0}]   ;;  %s4281_s15 = inlined_call_operand.vmem [shape: f32[8,128], index: 15, kind: output, shape index: {1}]   ;;  %s4282_s16 = inlined_call_operand.vmem [shape: f32[8,128], index: 16, kind: output, shape index: {2}]   ;;  %s4283_s17 = inlined_call_operand.vmem [shape: f32[8,128], index: 17, kind: output, shape index: {3}]  }
   0x1   :  { %4286 = sst [smem:[#allocation11_spill]] %s4266_s0 }
   0x2   :  { %4287 = sst [smem:[#allocation12_spill]] %s4267_s1 }
   0x3   :  { %23 = vsyncpa [#allocation5], 0 }
   0x4   :  { %24 = vsyncpa [#allocation7], 0  ;;  %s3881_s24 = smov [#allocation6]   ;;  %s3882_s26 = smov [#allocation4]  }
   0x5   :  { %s52_s25 = sshll.u32 %s3881_s24, 4  ;;  %s34_s27 = sshll.u32 %s3882_s26, 4  ;;  %s53_s25 = int_to_ptr.vmem [resolvable:$true] %s52_s25  ;;  %s35_s27 = int_to_ptr.vmem [resolvable:$true] %s34_s27 }
   0x6   :  { %s3825_s28 = scalar_lea.vmem %s53_s25, 16384  ;;  %p3830_p1 = scmp.lt.s32.totalorder %s53_s25, %s53_s25 }
   0x7   :  { %p3826_p0 = scmp.ne.s32.totalorder %s53_s25, %s3825_s28  ;;  %p3831_p2 = scmp.lt.s32.totalorder %s3825_s28, %s3825_s28 }
   0x9   :  { %p3832_p3 = por %p3831_p2, %p3830_p1 }
   0xb   :  { %p3833_p4 = pnand %p3832_p3, %p3826_p0 }
   0xd   :  { %3836 = shalt.err (!%p3833_p4)
}
   0xe   :  { %s3883_s29 = smov 128   ;;  %s3884_s0 = smov 8  }
   0xf   :  { %58 = dma.hbm_to_vmem [thread:$0]  %s4272_s6, 16384, %s53_s25, [#allocation7], %s3883_s29, %s3883_s29, %s3884_s0  }
  0x10   :  { %s3845_s19 = scalar_lea.vmem %s35_s27, 16384  ;;  %p3850_p6 = scmp.lt.s32.totalorder %s35_s27, %s35_s27 }
  0x11   :  { %p3846_p5 = scmp.ne.s32.totalorder %s35_s27, %s3845_s19  ;;  %p3851_p7 = scmp.lt.s32.totalorder %s3845_s19, %s3845_s19 }
  0x13   :  { %p3852_p8 = por %p3851_p7, %p3850_p6 }
  0x15   :  { %p3853_p9 = pnand %p3852_p8, %p3846_p5 }
  0x17   :  { %3856 = shalt.err (!%p3853_p9)
}
  0x18   :  { %40 = dma.hbm_to_vmem [thread:$0]  %s4268_s2, 16384, %s35_s27, [#allocation5], %s3883_s29, %s3883_s29, %s3884_s0  }
  0x19   :  { %s3885_s21 = smov [#allocation8]  }
  0x1a   :  { %s74_s22 = sshll.u32 %s3885_s21, 4  ;;  %s75_s22 = int_to_ptr.vmem [resolvable:$true] %s74_s22 }
  0x1b   :  { %s3865_s23 = scalar_lea.vmem %s75_s22, 1024  ;;  %p3870_p11 = scmp.lt.s32.totalorder %s75_s22, %s75_s22 }
  0x1c   :  { %p3866_p10 = scmp.ne.s32.totalorder %s75_s22, %s3865_s23  ;;  %p3871_p12 = scmp.lt.s32.totalorder %s3865_s23, %s3865_s23 }
  0x1e   :  { %p3872_p13 = por %p3871_p12, %p3870_p11 }
  0x20   :  { %p3873_p0 = pnand %p3872_p13, %p3866_p10 }
  0x22   :  { %3876 = shalt.err (!%p3873_p0)
}
  0x23   :  { %s3886_s6 = smov 64   ;;  %s3887_s24 = smov 4  }
  0x24   :  { %80 = dma.hbm_to_vmem [thread:$0]  %s4278_s12, 1024, %s75_s22, [#allocation7], %s3886_s6, %s3886_s6, %s3887_s24  }
  0x25   :  { %3877 = dma.done.wait [#allocation5], 16384  }
  0x26   :  { %3878 = vsyncadd [#allocation5], 4294950912 }
  0x27   :  { %3879 = dma.done.wait [#allocation7], 17408  }
  0x28   :  { %3880 = vsyncadd [#allocation7], 4294949888  ;;  %v3369_v0 = vld [vmem:[#allocation4 + $0x74] ss:$8 sps:$4 sm:$0xff]   ;;  %v3373_v2 = vld [vmem:[#allocation4 + $0x70] ss:$8 sps:$4 sm:$0xff]  }
  0x29   :  { %v3371_v1 = vld [vmem:[#allocation4 + $0x174] ss:$8 sps:$4 sm:$0xff]   ;;  %903 = vmatprep.subr.bf16.mxu0 %v3369_v0  ;;  %v3374_v3 = vld [vmem:[#allocation4 + $0x170] ss:$8 sps:$4 sm:$0xff]   ;;  %v3375_v4 = vld [vmem:[#allocation4 + $0x64] ss:$8 sps:$4 sm:$0xff]  }
  0x2a   :  { %944 = vmatprep.subr.bf16.mxu1 %v3371_v1  ;;  %904 = vmatpush1.bf16.msra.mxu0 %v3373_v2  ;;  %v3377_v5 = vld [vmem:[#allocation4 + $0x164] ss:$8 sps:$4 sm:$0xff]   ;;  %v3379_v6 = vld [vmem:[#allocation4 + $0x60] ss:$8 sps:$4 sm:$0xff]   ;;  %v3381_v8 = vld [vmem:[#allocation4 + $0x54] ss:$8 sps:$4 sm:$0xff]  }
  0x2b   :  { %945 = vmatpush1.bf16.msra.mxu1 %v3374_v3  ;;  %905 = vmatprep.subr.bf16.mxu0 %v3375_v4  ;;  %v3380_v7 = vld [vmem:[#allocation4 + $0x160] ss:$8 sps:$4 sm:$0xff]   ;;  %v3383_v9 = vld [vmem:[#allocation4 + $0x154] ss:$8 sps:$4 sm:$0xff]   ;;  %v3385_v10 = vld [vmem:[#allocation4 + $0x50] ss:$8 sps:$4 sm:$0xff]  }
  0x2c   :  { %946 = vmatprep.subr.bf16.mxu1 %v3377_v5  ;;  %v3386_v11 = vld [vmem:[#allocation4 + $0x150] ss:$8 sps:$4 sm:$0xff]   ;;  %v3387_v12 = vld [vmem:[#allocation4 + $0x44] ss:$8 sps:$4 sm:$0xff]   ;;  %v3391_v14 = vld [vmem:[#allocation4 + $0x40] ss:$8 sps:$4 sm:$0xff]  }
  0x2d   :  { %v3389_v13 = vld [vmem:[#allocation4 + $0x144] ss:$8 sps:$4 sm:$0xff]   ;;  %v3392_v15 = vld [vmem:[#allocation4 + $0x140] ss:$8 sps:$4 sm:$0xff]   ;;  %v3393_v16 = vld [vmem:[#allocation4 + $0x34] ss:$8 sps:$4 sm:$0xff]  }
  0x2e   :  { %906 = vmatpush1.bf16.msra.mxu0 %v3379_v6  ;;  %v3395_v17 = vld [vmem:[#allocation4 + $0x134] ss:$8 sps:$4 sm:$0xff]   ;;  %v3397_v18 = vld [vmem:[#allocation4 + $0x30] ss:$8 sps:$4 sm:$0xff]   ;;  %v3399_v20 = vld [vmem:[#allocation4 + $0x24] ss:$8 sps:$4 sm:$0xff]  }
  0x2f   :  { %947 = vmatpush1.bf16.msra.mxu1 %v3380_v7  ;;  %907 = vmatprep.subr.bf16.mxu0 %v3381_v8  ;;  %v3398_v19 = vld [vmem:[#allocation4 + $0x130] ss:$8 sps:$4 sm:$0xff]   ;;  %v3401_v21 = vld [vmem:[#allocation4 + $0x124] ss:$8 sps:$4 sm:$0xff]   ;;  %v3403_v22 = vld [vmem:[#allocation4 + $0x20] ss:$8 sps:$4 sm:$0xff]  }
  0x30   :  { %948 = vmatprep.subr.bf16.mxu1 %v3383_v9  ;;  %v3404_v23 = vld [vmem:[#allocation4 + $0x120] ss:$8 sps:$4 sm:$0xff]   ;;  %v3405_v24 = vld [vmem:[#allocation4 + $0x14] ss:$8 sps:$4 sm:$0xff]   ;;  %v3409_v26 = vld [vmem:[#allocation4 + $0x10] ss:$8 sps:$4 sm:$0xff]  }
  0x31   :  { %v3407_v25 = vld [vmem:[#allocation4 + $0x114] ss:$8 sps:$4 sm:$0xff]   ;;  %v3410_v27 = vld [vmem:[#allocation4 + $0x110] ss:$8 sps:$4 sm:$0xff]   ;;  %v3411_v28 = vld [vmem:[#allocation4 + $0x4] ss:$8 sps:$4 sm:$0xff]  }
  0x32   :  { %908 = vmatpush1.bf16.msra.mxu0 %v3385_v10  ;;  %v3413_v29 = vld [vmem:[#allocation4 + $0x104] ss:$8 sps:$4 sm:$0xff]   ;;  %v3415_v30 = vld [vmem:[#allocation4] ss:$8 sps:$4 sm:$0xff]   ;;  %v3417_v32 = vld [vmem:[#allocation4 + $0xf4] ss:$8 sps:$4 sm:$0xff]  }
  0x33   :  { %949 = vmatpush1.bf16.msra.mxu1 %v3386_v11  ;;  %909 = vmatprep.subr.bf16.mxu0 %v3387_v12  ;;  %v3416_v31 = vld [vmem:[#allocation4 + $0x100] ss:$8 sps:$4 sm:$0xff]   ;;  %v3419_v33 = vld [vmem:[#allocation4 + $0x1f4] ss:$8 sps:$4 sm:$0xff]   ;;  %v3421_v34 = vld [vmem:[#allocation4 + $0xf0] ss:$8 sps:$4 sm:$0xff]  }
  0x34   :  { %950 = vmatprep.subr.bf16.mxu1 %v3389_v13  ;;  %v3422_v35 = vld [vmem:[#allocation4 + $0x1f0] ss:$8 sps:$4 sm:$0xff]   ;;  %v3423_v36 = vld [vmem:[#allocation4 + $0xe4] ss:$8 sps:$4 sm:$0xff]   ;;  %v3427_v38 = vld [vmem:[#allocation4 + $0xe0] ss:$8 sps:$4 sm:$0xff]  }
  0x35   :  { %v3425_v37 = vld [vmem:[#allocation4 + $0x1e4] ss:$8 sps:$4 sm:$0xff]   ;;  %v3428_v39 = vld [vmem:[#allocation4 + $0x1e0] ss:$8 sps:$4 sm:$0xff]   ;;  %v3429_v40 = vld [vmem:[#allocation4 + $0xd4] ss:$8 sps:$4 sm:$0xff]  }
  0x36   :  { %910 = vmatpush1.bf16.msra.mxu0 %v3391_v14  ;;  %v3431_v41 = vld [vmem:[#allocation4 + $0x1d4] ss:$8 sps:$4 sm:$0xff]   ;;  %v3433_v42 = vld [vmem:[#allocation4 + $0xd0] ss:$8 sps:$4 sm:$0xff]   ;;  %v3435_v44 = vld [vmem:[#allocation4 + $0xc4] ss:$8 sps:$4 sm:$0xff]  }
  0x37   :  { %951 = vmatpush1.bf16.msra.mxu1 %v3392_v15  ;;  %911 = vmatprep.subr.bf16.mxu0 %v3393_v16  ;;  %v3434_v43 = vld [vmem:[#allocation4 + $0x1d0] ss:$8 sps:$4 sm:$0xff]   ;;  %v3437_v45 = vld [vmem:[#allocation4 + $0x1c4] ss:$8 sps:$4 sm:$0xff]   ;;  %s4288_s27 = sld [smem:[#allocation11_spill]]  ;;  %vm3889_vm0 = vmmov 0  }
  0x38   :  { %952 = vmatprep.subr.bf16.mxu1 %v3395_v17  ;;  %v3439_v47 = vld [vmem:[#allocation4 + $0xc0] ss:$8 sps:$4 sm:$0xff]   ;;  %v3441_v51 = vld [vmem:[#allocation4 + $0xb4] ss:$8 sps:$4 sm:$0xff]   ;;  %v3445_v54 = vld [vmem:[#allocation4 + $0xb0] ss:$8 sps:$4 sm:$0xff]  }
  0x39   :  { %v3440_v48 = vld [vmem:[#allocation4 + $0x1c0] ss:$8 sps:$4 sm:$0xff]   ;;  %v3443_v53 = vld [vmem:[#allocation4 + $0x1b4] ss:$8 sps:$4 sm:$0xff]   ;;  %v3446_v55 = vld [vmem:[#allocation4 + $0x1b0] ss:$8 sps:$4 sm:$0xff]  }
  0x3a   :  { %912 = vmatpush1.bf16.msra.mxu0 %v3397_v18  ;;  %v3447_v56 = vld [vmem:[#allocation4 + $0xa4] ss:$8 sps:$4 sm:$0xff]   ;;  %v3451_v58 = vld [vmem:[#allocation4 + $0xa0] ss:$8 sps:$4 sm:$0xff]   ;;  %v3453_v60 = vld [vmem:[#allocation4 + $0x94] ss:$8 sps:$4 sm:$0xff]  }
  0x3b   :  { %953 = vmatpush1.bf16.msra.mxu1 %v3398_v19  ;;  %913 = vmatprep.subr.bf16.mxu0 %v3399_v20  ;;  %v3449_v57 = vld [vmem:[#allocation4 + $0x1a4] ss:$8 sps:$4 sm:$0xff]   ;;  %v3452_v59 = vld [vmem:[#allocation4 + $0x1a0] ss:$8 sps:$4 sm:$0xff]   ;;  %v3455_v61 = vld [vmem:[#allocation4 + $0x194] ss:$8 sps:$4 sm:$0xff]  }
  0x3c   :  { %954 = vmatprep.subr.bf16.mxu1 %v3401_v21  ;;  %v3457_v62 = vld [vmem:[#allocation4 + $0x90] ss:$8 sps:$4 sm:$0xff]   ;;  %v3459_v0 = vld [vmem:[#allocation4 + $0x84] ss:$8 sps:$4 sm:$0xff]   ;;  %v3463_v2 = vld [vmem:[#allocation4 + $0x80] ss:$8 sps:$4 sm:$0xff]  }
  0x3d   :  { %v102_v46 = vld [vmem:[%s4288_s27 + $0x8] sm:$0xff]  ;;  %v104_v50 = vld [vmem:[%s4288_s27 + $0x18] sm:$0xff]  ;;  %v101_v4 = vld [vmem:[%s4288_s27] sm:$0xff]  ;;  %s4289_s12 = sld [smem:[#allocation12_spill]] }
  0x3e   :  { %914 = vmatpush1.bf16.msra.mxu0 %v3403_v22  ;;  %v110_v49 = vpack.c.bf16 %v102_v46, %v102_v46  ;;  %v112_v52 = vpack.c.bf16 %v104_v50, %v104_v50  ;;  %v3458_v63 = vld [vmem:[#allocation4 + $0x190] ss:$8 sps:$4 sm:$0xff]   ;;  %v3461_v1 = vld [vmem:[#allocation4 + $0x184] ss:$8 sps:$4 sm:$0xff]   ;;  %v3464_v3 = vld [vmem:[#allocation4 + $0x180] ss:$8 sps:$4 sm:$0xff]   ;;  %v109_v8 = vpack.c.bf16 %v101_v4, %v101_v4 }
  0x3f   :  { %955 = vmatpush1.bf16.msra.mxu1 %v3404_v23  ;;  %915 = vmatprep.subr.bf16.mxu0 %v3405_v24  ;;  %v103_v5 = vld [vmem:[%s4288_s27 + $0x10] sm:$0xff]  ;;  %v3473_v12 = vld [vmem:[#allocation4 + $0x264] ss:$8 sps:$4 sm:$0xff]   ;;  %v3471_v14 = vld [vmem:[#allocation4 + $0x260] ss:$8 sps:$4 sm:$0xff]  }
  0x40   :  { %956 = vmatprep.subr.bf16.mxu1 %v3407_v25  ;;  %935 = vmatprep.mubr.bf16.mxu0 %v110_v49  ;;  %v3467_v6 = vld [vmem:[#allocation4 + $0x274] ss:$8 sps:$4 sm:$0xff]   ;;  %v111_v9 = vpack.c.bf16 %v103_v5, %v103_v5  ;;  %v3465_v10 = vld [vmem:[#allocation4 + $0x270] ss:$8 sps:$4 sm:$0xff]   ;;  %v3476_v13 = vld [vmem:[#allocation4 + $0x364] ss:$8 sps:$4 sm:$0xff]  }
  0x41   :  { %976 = vmatprep.mubr.bf16.mxu1 %v112_v52  ;;  %v3470_v7 = vld [vmem:[#allocation4 + $0x374] ss:$8 sps:$4 sm:$0xff]   ;;  %v3468_v11 = vld [vmem:[#allocation4 + $0x370] ss:$8 sps:$4 sm:$0xff]   ;;  %v3474_v15 = vld [vmem:[#allocation4 + $0x360] ss:$8 sps:$4 sm:$0xff]  }
  0x42   :  { %916 = vmatpush1.bf16.msra.mxu0 %v3409_v26  ;;  %v3479_v16 = vld [vmem:[#allocation4 + $0x254] ss:$8 sps:$4 sm:$0xff]   ;;  %v3477_v18 = vld [vmem:[#allocation4 + $0x250] ss:$8 sps:$4 sm:$0xff]   ;;  %v3485_v20 = vld [vmem:[#allocation4 + $0x244] ss:$8 sps:$4 sm:$0xff]  }
  0x43   :  { %957 = vmatpush1.bf16.msra.mxu1 %v3410_v27  ;;  %917 = vmatprep.subr.bf16.mxu0 %v3411_v28  ;;  %v3482_v17 = vld [vmem:[#allocation4 + $0x354] ss:$8 sps:$4 sm:$0xff]   ;;  %v3480_v19 = vld [vmem:[#allocation4 + $0x350] ss:$8 sps:$4 sm:$0xff]   ;;  %v3488_v21 = vld [vmem:[#allocation4 + $0x344] ss:$8 sps:$4 sm:$0xff]  }
  0x44   :  { %958 = vmatprep.subr.bf16.mxu1 %v3413_v29  ;;  %v3483_v22 = vld [vmem:[#allocation4 + $0x240] ss:$8 sps:$4 sm:$0xff]   ;;  %v3491_v24 = vld [vmem:[#allocation4 + $0x234] ss:$8 sps:$4 sm:$0xff]   ;;  %v3489_v26 = vld [vmem:[#allocation4 + $0x230] ss:$8 sps:$4 sm:$0xff]  }
  0x45   :  { %v3486_v23 = vld [vmem:[#allocation4 + $0x340] ss:$8 sps:$4 sm:$0xff]   ;;  %v3494_v25 = vld [vmem:[#allocation4 + $0x334] ss:$8 sps:$4 sm:$0xff]   ;;  %v3492_v27 = vld [vmem:[#allocation4 + $0x330] ss:$8 sps:$4 sm:$0xff]  }
  0x46   :  { %918 = vmatpush1.bf16.msra.mxu0 %v3415_v30  ;;  %v3497_v28 = vld [vmem:[#allocation4 + $0x224] ss:$8 sps:$4 sm:$0xff]   ;;  %v3495_v30 = vld [vmem:[#allocation4 + $0x220] ss:$8 sps:$4 sm:$0xff]   ;;  %v3513_v46 = vld [vmem:[#allocation4 + $0x2f0] ss:$8 sps:$4 sm:$0xff]  }
  0x47   :  { %959 = vmatpush1.bf16.msra.mxu1 %v3416_v31  ;;  %919 = vmatprep.subr.bf16.mxu0 %v3417_v32  ;;  %v3500_v29 = vld [vmem:[#allocation4 + $0x324] ss:$8 sps:$4 sm:$0xff]   ;;  %v3498_v31 = vld [vmem:[#allocation4 + $0x320] ss:$8 sps:$4 sm:$0xff]   ;;  %v3503_v32 = vld [vmem:[#allocation4 + $0x214] ss:$8 sps:$4 sm:$0xff]  }
  0x48   :  { %960 = vmatprep.subr.bf16.mxu1 %v3419_v33  ;;  %v3506_v33 = vld [vmem:[#allocation4 + $0x314] ss:$8 sps:$4 sm:$0xff]   ;;  %v3524_v49 = vld [vmem:[#allocation4 + $0x3e4] ss:$8 sps:$4 sm:$0xff]   ;;  %v3519_v50 = vld [vmem:[#allocation4 + $0x2e0] ss:$8 sps:$4 sm:$0xff]  }
  0x49   :  { %v3527_v52 = vld [vmem:[#allocation4 + $0x2d4] ss:$8 sps:$4 sm:$0xff]  }
  0x4a   :  { %920 = vmatpush2.bf16.msra.mxu0 %v3421_v34  ;;  %v106_v34 = vld [vmem:[%s4288_s27 + $0x28] sm:$0xff]  ;;  %v3551_v4 = vld [vmem:[#allocation4 + $0x294] ss:$8 sps:$4 sm:$0xff]  }
  0x4b   :  { %961 = vmatpush2.bf16.msra.mxu1 %v3422_v35  ;;  %921 = vmatprep.subr.bf16.mxu0 %v3423_v36  ;;  %v3501_v35 = vld [vmem:[#allocation4 + $0x210] ss:$8 sps:$4 sm:$0xff]   ;;  %v3554_v5 = vld [vmem:[#allocation4 + $0x394] ss:$8 sps:$4 sm:$0xff]  }
  0x4c   :  { %962 = vmatprep.subr.bf16.mxu1 %v3425_v37  ;;  %v3504_v36 = vld [vmem:[#allocation4 + $0x310] ss:$8 sps:$4 sm:$0xff]   ;;  %v114_v37 = vpack.c.bf16 %v106_v34, %v106_v34  ;;  %v3579_v34 = vld [vmem:[#allocation6 + $0x40] ss:$8 sps:$4 sm:$0xff]  }
  0x4e   :  { %922 = vmatpush2.bf16.msra.mxu0 %v3427_v38  ;;  %v108_v38 = vld [vmem:[%s4288_s27 + $0x38] sm:$0xff] }
  0x4f   :  { %963 = vmatpush2.bf16.msra.mxu1 %v3428_v39  ;;  %923 = vmatprep.subr.bf16.mxu0 %v3429_v40  ;;  %v3509_v39 = vld [vmem:[#allocation4 + $0x204] ss:$8 sps:$4 sm:$0xff]   ;;  %v116_v40 = vpack.c.bf16 %v108_v38, %v108_v38  ;;  %v3585_v38 = vld [vmem:[#allocation6 + $0x30] ss:$8 sps:$4 sm:$0xff]  }
  0x50   :  { %964 = vmatprep.subr.bf16.mxu1 %v3431_v41  ;;  %v3512_v41 = vld [vmem:[#allocation4 + $0x304] ss:$8 sps:$4 sm:$0xff]  }
  0x52   :  { %924 = vmatpush2.bf16.msra.mxu0 %v3433_v42  ;;  %v3507_v42 = vld [vmem:[#allocation4 + $0x200] ss:$8 sps:$4 sm:$0xff]  }
  0x53   :  { %965 = vmatpush2.bf16.msra.mxu1 %v3434_v43  ;;  %925 = vmatprep.subr.bf16.mxu0 %v3435_v44  ;;  %v3510_v43 = vld [vmem:[#allocation4 + $0x300] ss:$8 sps:$4 sm:$0xff]   ;;  %v3515_v44 = vld [vmem:[#allocation4 + $0x2f4] ss:$8 sps:$4 sm:$0xff]  }
  0x54   :  { %966 = vmatprep.subr.bf16.mxu1 %v3437_v45  ;;  %v3518_v45 = vld [vmem:[#allocation4 + $0x3f4] ss:$8 sps:$4 sm:$0xff]  }
  0x56   :  { %926 = vmatpush2.bf16.msra.mxu0 %v3439_v47  ;;  %v3516_v47 = vld [vmem:[#allocation4 + $0x3f0] ss:$8 sps:$4 sm:$0xff]  }
  0x57   :  { %967 = vmatpush2.bf16.msra.mxu1 %v3440_v48  ;;  %927 = vmatprep.subr.bf16.mxu0 %v3441_v51  ;;  %v3521_v48 = vld [vmem:[#allocation4 + $0x2e4] ss:$8 sps:$4 sm:$0xff]   ;;  %v3522_v51 = vld [vmem:[#allocation4 + $0x3e0] ss:$8 sps:$4 sm:$0xff]  }
  0x58   :  { %968 = vmatprep.subr.bf16.mxu1 %v3443_v53  ;;  %v3530_v53 = vld [vmem:[#allocation4 + $0x3d4] ss:$8 sps:$4 sm:$0xff]  }
  0x5a   :  { %928 = vmatpush2.bf16.msra.mxu0 %v3445_v54  ;;  %v3525_v54 = vld [vmem:[#allocation4 + $0x2d0] ss:$8 sps:$4 sm:$0xff]  }
  0x5b   :  { %969 = vmatpush2.bf16.msra.mxu1 %v3446_v55  ;;  %929 = vmatprep.subr.bf16.mxu0 %v3447_v56  ;;  %v3528_v55 = vld [vmem:[#allocation4 + $0x3d0] ss:$8 sps:$4 sm:$0xff]   ;;  %v3533_v56 = vld [vmem:[#allocation4 + $0x2c4] ss:$8 sps:$4 sm:$0xff]  }
  0x5c   :  { %970 = vmatprep.subr.bf16.mxu1 %v3449_v57  ;;  %v3536_v57 = vld [vmem:[#allocation4 + $0x3c4] ss:$8 sps:$4 sm:$0xff]  }
  0x5e   :  { %930 = vmatpush2.bf16.msra.mxu0 %v3451_v58  ;;  %v3531_v58 = vld [vmem:[#allocation4 + $0x2c0] ss:$8 sps:$4 sm:$0xff]  }
  0x5f   :  { %971 = vmatpush2.bf16.msra.mxu1 %v3452_v59  ;;  %931 = vmatprep.subr.bf16.mxu0 %v3453_v60  ;;  %v3534_v59 = vld [vmem:[#allocation4 + $0x3c0] ss:$8 sps:$4 sm:$0xff]   ;;  %v3539_v60 = vld [vmem:[#allocation4 + $0x2b4] ss:$8 sps:$4 sm:$0xff]  }
  0x60   :  { %972 = vmatprep.subr.bf16.mxu1 %v3455_v61  ;;  %v3542_v61 = vld [vmem:[#allocation4 + $0x3b4] ss:$8 sps:$4 sm:$0xff]  }
  0x62   :  { %932 = vmatpush2.bf16.msra.mxu0 %v3457_v62  ;;  %v3537_v62 = vld [vmem:[#allocation4 + $0x2b0] ss:$8 sps:$4 sm:$0xff]  }
  0x63   :  { %973 = vmatpush2.bf16.msra.mxu1 %v3458_v63  ;;  %933 = vmatprep.subr.bf16.mxu0 %v3459_v0  ;;  %v3540_v63 = vld [vmem:[#allocation4 + $0x3b0] ss:$8 sps:$4 sm:$0xff]   ;;  %v3545_v0 = vld [vmem:[#allocation4 + $0x2a4] ss:$8 sps:$4 sm:$0xff]  }
  0x64   :  { %974 = vmatprep.subr.bf16.mxu1 %v3461_v1  ;;  %v3548_v1 = vld [vmem:[#allocation4 + $0x3a4] ss:$8 sps:$4 sm:$0xff]  }
  0x66   :  { %934 = vmatpush2.bf16.msra.mxu0 %v3463_v2  ;;  %v3543_v2 = vld [vmem:[#allocation4 + $0x2a0] ss:$8 sps:$4 sm:$0xff]  }
  0x67   :  { %975 = vmatpush2.bf16.msra.mxu1 %v3464_v3  ;;  %985 = vmatprep.subr.bf16.mxu0 %v3467_v6  ;;  %v3546_v3 = vld [vmem:[#allocation4 + $0x3a0] ss:$8 sps:$4 sm:$0xff]   ;;  %v3549_v6 = vld [vmem:[#allocation4 + $0x290] ss:$8 sps:$4 sm:$0xff]  }
  0x68   :  { %1026 = vmatprep.subr.bf16.mxu1 %v3470_v7  ;;  %v3552_v7 = vld [vmem:[#allocation4 + $0x390] ss:$8 sps:$4 sm:$0xff]  }
  0x69   :  { %936 = vmatmul.mubr.bf16.vlgmr.msra.gmra.mxu0 %v109_v8  ;;  %v3557_v8 = vld [vmem:[#allocation4 + $0x284] ss:$8 sps:$4 sm:$0xff]  }
  0x6a   :  { %977 = vmatmul.mubr.bf16.vlgmr.msra.gmra.mxu1 %v111_v9  ;;  %986 = vmatpush1.bf16.msra.mxu0 %v3465_v10  ;;  %v3560_v9 = vld [vmem:[#allocation4 + $0x384] ss:$8 sps:$4 sm:$0xff]   ;;  %v3555_v10 = vld [vmem:[#allocation4 + $0x280] ss:$8 sps:$4 sm:$0xff]  }
  0x6b   :  { %1027 = vmatpush1.bf16.msra.mxu1 %v3468_v11  ;;  %987 = vmatprep.subr.bf16.mxu0 %v3473_v12  ;;  %v3558_v11 = vld [vmem:[#allocation4 + $0x380] ss:$8 sps:$4 sm:$0xff]  }
  0x6c   :  { %1028 = vmatprep.subr.bf16.mxu1 %v3476_v13  ;;  %1017 = vmatprep.mubr.bf16.mxu0 %v114_v37  ;;  %v105_v12 = vld [vmem:[%s4288_s27 + $0x20] sm:$0xff]  ;;  %v107_v13 = vld [vmem:[%s4288_s27 + $0x30] sm:$0xff] }
  0x6d   :  { %1058 = vmatprep.mubr.bf16.mxu1 %v116_v40  ;;  %v3590_v37 = vld [vmem:[#allocation6 + $0x134] ss:$8 sps:$4 sm:$0xff]   ;;  %v3593_v40 = vld [vmem:[#allocation6 + $0x24] ss:$8 sps:$4 sm:$0xff]  }
  0x6e   :  { %988 = vmatpush1.bf16.msra.mxu0 %v3471_v14  ;;  %v3563_v14 = vld [vmem:[#allocation6 + $0x74] ss:$8 sps:$4 sm:$0xff]  }
  0x6f   :  { %1029 = vmatpush1.bf16.msra.mxu1 %v3474_v15  ;;  %989 = vmatprep.subr.bf16.mxu0 %v3479_v16  ;;  %v3566_v15 = vld [vmem:[#allocation6 + $0x174] ss:$8 sps:$4 sm:$0xff]   ;;  %v113_v16 = vpack.c.bf16 %v105_v12, %v105_v12 }
  0x70   :  { %1030 = vmatprep.subr.bf16.mxu1 %v3482_v17  ;;  %v115_v17 = vpack.c.bf16 %v107_v13, %v107_v13  ;;  %v3647_v12 = vld [vmem:[#allocation6 + $0x94] ss:$8 sps:$4 sm:$0xff]  }
  0x71   :  { %v3650_v13 = vld [vmem:[#allocation6 + $0x194] ss:$8 sps:$4 sm:$0xff]  }
  0x72   :  { %990 = vmatpush1.bf16.msra.mxu0 %v3477_v18  ;;  %v3561_v18 = vld [vmem:[#allocation6 + $0x70] ss:$8 sps:$4 sm:$0xff]  }
  0x73   :  { %1031 = vmatpush1.bf16.msra.mxu1 %v3480_v19  ;;  %991 = vmatprep.subr.bf16.mxu0 %v3485_v20  ;;  %v3564_v19 = vld [vmem:[#allocation6 + $0x170] ss:$8 sps:$4 sm:$0xff]   ;;  %v3569_v20 = vld [vmem:[#allocation6 + $0x64] ss:$8 sps:$4 sm:$0xff]  }
  0x74   :  { %1032 = vmatprep.subr.bf16.mxu1 %v3488_v21  ;;  %v3572_v21 = vld [vmem:[#allocation6 + $0x164] ss:$8 sps:$4 sm:$0xff]  }
  0x76   :  { %992 = vmatpush1.bf16.msra.mxu0 %v3483_v22  ;;  %v118_v22 = vld [vmem:[%s4289_s12 + $0x8] sm:$0xff] }
  0x77   :  { %1033 = vmatpush1.bf16.msra.mxu1 %v3486_v23  ;;  %993 = vmatprep.subr.bf16.mxu0 %v3491_v24  ;;  %v3567_v23 = vld [vmem:[#allocation6 + $0x60] ss:$8 sps:$4 sm:$0xff]  }
  0x78   :  { %1034 = vmatprep.subr.bf16.mxu1 %v3494_v25  ;;  %v3570_v24 = vld [vmem:[#allocation6 + $0x160] ss:$8 sps:$4 sm:$0xff]   ;;  %v126_v25 = vpack.c.bf16 %v118_v22, %v118_v22  ;;  %v3659_v22 = vld [vmem:[#allocation6 + $0x274] ss:$8 sps:$4 sm:$0xff]  }
  0x7a   :  { %994 = vmatpush1.bf16.msra.mxu0 %v3489_v26  ;;  %v120_v26 = vld [vmem:[%s4289_s12 + $0x18] sm:$0xff] }
  0x7b   :  { %1035 = vmatpush1.bf16.msra.mxu1 %v3492_v27  ;;  %995 = vmatprep.subr.bf16.mxu0 %v3497_v28  ;;  %v3575_v27 = vld [vmem:[#allocation6 + $0x54] ss:$8 sps:$4 sm:$0xff]   ;;  %v128_v28 = vpack.c.bf16 %v120_v26, %v120_v26  ;;  %v3657_v26 = vld [vmem:[#allocation6 + $0x270] ss:$8 sps:$4 sm:$0xff]  }
  0x7c   :  { %1036 = vmatprep.subr.bf16.mxu1 %v3500_v29  ;;  %v3578_v29 = vld [vmem:[#allocation6 + $0x154] ss:$8 sps:$4 sm:$0xff]  }
  0x7e   :  { %996 = vmatpush1.bf16.msra.mxu0 %v3495_v30  ;;  %v3573_v30 = vld [vmem:[#allocation6 + $0x50] ss:$8 sps:$4 sm:$0xff]  }
  0x7f   :  { %1037 = vmatpush1.bf16.msra.mxu1 %v3498_v31  ;;  %997 = vmatprep.subr.bf16.mxu0 %v3503_v32  ;;  %v3576_v31 = vld [vmem:[#allocation6 + $0x150] ss:$8 sps:$4 sm:$0xff]   ;;  %v3581_v32 = vld [vmem:[#allocation6 + $0x44] ss:$8 sps:$4 sm:$0xff]  }
  0x80   :  { %1038 = vmatprep.subr.bf16.mxu1 %v3506_v33  ;;  %v3584_v33 = vld [vmem:[#allocation6 + $0x144] ss:$8 sps:$4 sm:$0xff]  }
  0x82   :  { %998 = vmatpush1.bf16.msra.mxu0 %v3501_v35  ;;  %v3582_v35 = vld [vmem:[#allocation6 + $0x140] ss:$8 sps:$4 sm:$0xff]  }
  0x83   :  { %1039 = vmatpush1.bf16.msra.mxu1 %v3504_v36  ;;  %999 = vmatprep.subr.bf16.mxu0 %v3509_v39  ;;  %v3587_v36 = vld [vmem:[#allocation6 + $0x34] ss:$8 sps:$4 sm:$0xff]   ;;  %v3588_v39 = vld [vmem:[#allocation6 + $0x130] ss:$8 sps:$4 sm:$0xff]  }
  0x84   :  { %1040 = vmatprep.subr.bf16.mxu1 %v3512_v41  ;;  %v3596_v41 = vld [vmem:[#allocation6 + $0x124] ss:$8 sps:$4 sm:$0xff]  }
  0x86   :  { %1000 = vmatpush1.bf16.msra.mxu0 %v3507_v42  ;;  %v3591_v42 = vld [vmem:[#allocation6 + $0x20] ss:$8 sps:$4 sm:$0xff]  }
  0x87   :  { %1041 = vmatpush1.bf16.msra.mxu1 %v3510_v43  ;;  %1001 = vmatprep.subr.bf16.mxu0 %v3515_v44  ;;  %v3594_v43 = vld [vmem:[#allocation6 + $0x120] ss:$8 sps:$4 sm:$0xff]   ;;  %v3599_v44 = vld [vmem:[#allocation6 + $0x14] ss:$8 sps:$4 sm:$0xff]  }
  0x88   :  { %1042 = vmatprep.subr.bf16.mxu1 %v3518_v45  ;;  %v3602_v45 = vld [vmem:[#allocation6 + $0x114] ss:$8 sps:$4 sm:$0xff]  }
  0x8a   :  { %1002 = vmatpush2.bf16.msra.mxu0 %v3513_v46  ;;  %v3597_v46 = vld [vmem:[#allocation6 + $0x10] ss:$8 sps:$4 sm:$0xff]  }
  0x8b   :  { %1043 = vmatpush2.bf16.msra.mxu1 %v3516_v47  ;;  %1003 = vmatprep.subr.bf16.mxu0 %v3521_v48  ;;  %v3600_v47 = vld [vmem:[#allocation6 + $0x110] ss:$8 sps:$4 sm:$0xff]   ;;  %v3605_v48 = vld [vmem:[#allocation6 + $0x4] ss:$8 sps:$4 sm:$0xff]  }
  0x8c   :  { %1044 = vmatprep.subr.bf16.mxu1 %v3524_v49  ;;  %v3608_v49 = vld [vmem:[#allocation6 + $0x104] ss:$8 sps:$4 sm:$0xff]  }
  0x8e   :  { %1004 = vmatpush2.bf16.msra.mxu0 %v3519_v50  ;;  %v3603_v50 = vld [vmem:[#allocation6] ss:$8 sps:$4 sm:$0xff]  }
  0x8f   :  { %1045 = vmatpush2.bf16.msra.mxu1 %v3522_v51  ;;  %1005 = vmatprep.subr.bf16.mxu0 %v3527_v52  ;;  %v3606_v51 = vld [vmem:[#allocation6 + $0x100] ss:$8 sps:$4 sm:$0xff]   ;;  %v3611_v52 = vld [vmem:[#allocation6 + $0xf4] ss:$8 sps:$4 sm:$0xff]  }
  0x90   :  { %1046 = vmatprep.subr.bf16.mxu1 %v3530_v53  ;;  %v3614_v53 = vld [vmem:[#allocation6 + $0x1f4] ss:$8 sps:$4 sm:$0xff]  }
  0x92   :  { %1006 = vmatpush2.bf16.msra.mxu0 %v3525_v54  ;;  %v3609_v54 = vld [vmem:[#allocation6 + $0xf0] ss:$8 sps:$4 sm:$0xff]  }
  0x93   :  { %1047 = vmatpush2.bf16.msra.mxu1 %v3528_v55  ;;  %1007 = vmatprep.subr.bf16.mxu0 %v3533_v56  ;;  %v3612_v55 = vld [vmem:[#allocation6 + $0x1f0] ss:$8 sps:$4 sm:$0xff]   ;;  %v3617_v56 = vld [vmem:[#allocation6 + $0xe4] ss:$8 sps:$4 sm:$0xff]  }
  0x94   :  { %1048 = vmatprep.subr.bf16.mxu1 %v3536_v57  ;;  %v3620_v57 = vld [vmem:[#allocation6 + $0x1e4] ss:$8 sps:$4 sm:$0xff]  }
  0x96   :  { %1008 = vmatpush2.bf16.msra.mxu0 %v3531_v58  ;;  %v3615_v58 = vld [vmem:[#allocation6 + $0xe0] ss:$8 sps:$4 sm:$0xff]  }
  0x97   :  { %1049 = vmatpush2.bf16.msra.mxu1 %v3534_v59  ;;  %1009 = vmatprep.subr.bf16.mxu0 %v3539_v60  ;;  %v3618_v59 = vld [vmem:[#allocation6 + $0x1e0] ss:$8 sps:$4 sm:$0xff]   ;;  %v3623_v60 = vld [vmem:[#allocation6 + $0xd4] ss:$8 sps:$4 sm:$0xff]  }
  0x98   :  { %1050 = vmatprep.subr.bf16.mxu1 %v3542_v61  ;;  %v3626_v61 = vld [vmem:[#allocation6 + $0x1d4] ss:$8 sps:$4 sm:$0xff]  }
  0x9a   :  { %1010 = vmatpush2.bf16.msra.mxu0 %v3537_v62  ;;  %v3621_v62 = vld [vmem:[#allocation6 + $0xd0] ss:$8 sps:$4 sm:$0xff]  }
  0x9b   :  { %1051 = vmatpush2.bf16.msra.mxu1 %v3540_v63  ;;  %1011 = vmatprep.subr.bf16.mxu0 %v3545_v0  ;;  %v3624_v63 = vld [vmem:[#allocation6 + $0x1d0] ss:$8 sps:$4 sm:$0xff]   ;;  %v3629_v0 = vld [vmem:[#allocation6 + $0xc4] ss:$8 sps:$4 sm:$0xff]  }
  0x9c   :  { %1052 = vmatprep.subr.bf16.mxu1 %v3548_v1  ;;  %v3632_v1 = vld [vmem:[#allocation6 + $0x1c4] ss:$8 sps:$4 sm:$0xff]  }
  0x9e   :  { %1012 = vmatpush2.bf16.msra.mxu0 %v3543_v2  ;;  %v3627_v2 = vld [vmem:[#allocation6 + $0xc0] ss:$8 sps:$4 sm:$0xff]  }
  0x9f   :  { %1053 = vmatpush2.bf16.msra.mxu1 %v3546_v3  ;;  %1013 = vmatprep.subr.bf16.mxu0 %v3551_v4  ;;  %v3630_v3 = vld [vmem:[#allocation6 + $0x1c0] ss:$8 sps:$4 sm:$0xff]   ;;  %v3635_v4 = vld [vmem:[#allocation6 + $0xb4] ss:$8 sps:$4 sm:$0xff]  }
  0xa0   :  { %1054 = vmatprep.subr.bf16.mxu1 %v3554_v5  ;;  %v3638_v5 = vld [vmem:[#allocation6 + $0x1b4] ss:$8 sps:$4 sm:$0xff]  }
  0xa2   :  { %1014 = vmatpush2.bf16.msra.mxu0 %v3549_v6  ;;  %v3633_v6 = vld [vmem:[#allocation6 + $0xb0] ss:$8 sps:$4 sm:$0xff]  }
  0xa3   :  { %1055 = vmatpush2.bf16.msra.mxu1 %v3552_v7  ;;  %1015 = vmatprep.subr.bf16.mxu0 %v3557_v8  ;;  %v3636_v7 = vld [vmem:[#allocation6 + $0x1b0] ss:$8 sps:$4 sm:$0xff]   ;;  %v3641_v8 = vld [vmem:[#allocation6 + $0xa4] ss:$8 sps:$4 sm:$0xff]  }
  0xa4   :  { %1056 = vmatprep.subr.bf16.mxu1 %v3560_v9  ;;  %v3644_v9 = vld [vmem:[#allocation6 + $0x1a4] ss:$8 sps:$4 sm:$0xff]  }
  0xa6   :  { %1016 = vmatpush2.bf16.msra.mxu0 %v3555_v10  ;;  %v3639_v10 = vld [vmem:[#allocation6 + $0xa0] ss:$8 sps:$4 sm:$0xff]  }
  0xa7   :  { %1057 = vmatpush2.bf16.msra.mxu1 %v3558_v11  ;;  %1841 = vmatprep.subr.bf16.mxu0 %v3563_v14  ;;  %v3642_v11 = vld [vmem:[#allocation6 + $0x1a0] ss:$8 sps:$4 sm:$0xff]   ;;  %v3645_v14 = vld [vmem:[#allocation6 + $0x90] ss:$8 sps:$4 sm:$0xff]  }
  0xa8   :  { %1882 = vmatprep.subr.bf16.mxu1 %v3566_v15  ;;  %v3648_v15 = vld [vmem:[#allocation6 + $0x190] ss:$8 sps:$4 sm:$0xff]  }
  0xa9   :  { %1018 = vmatmul.mubr.bf16.vlgmr.msra.gmra.mxu0 %v113_v16  ;;  %v3653_v16 = vld [vmem:[#allocation6 + $0x84] ss:$8 sps:$4 sm:$0xff]  }
  0xaa   :  { %1059 = vmatmul.mubr.bf16.vlgmr.msra.gmra.mxu1 %v115_v17  ;;  %1842 = vmatpush1.bf16.msra.mxu0 %v3561_v18  ;;  %v3656_v17 = vld [vmem:[#allocation6 + $0x184] ss:$8 sps:$4 sm:$0xff]   ;;  %v3651_v18 = vld [vmem:[#allocation6 + $0x80] ss:$8 sps:$4 sm:$0xff]  }
  0xab   :  { %1883 = vmatpush1.bf16.msra.mxu1 %v3564_v19  ;;  %1843 = vmatprep.subr.bf16.mxu0 %v3569_v20  ;;  %v3654_v19 = vld [vmem:[#allocation6 + $0x180] ss:$8 sps:$4 sm:$0xff]  }
  0xac   :  { %1884 = vmatprep.subr.bf16.mxu1 %v3572_v21  ;;  %1873 = vmatprep.mubr.bf16.mxu0 %v126_v25  ;;  %v117_v20 = vld [vmem:[%s4289_s12] sm:$0xff]  ;;  %v119_v21 = vld [vmem:[%s4289_s12 + $0x10] sm:$0xff]  ;;  %v124_v25 = vld [vmem:[%s4289_s12 + $0x38] sm:$0xff] }
  0xad   :  { %1914 = vmatprep.mubr.bf16.mxu1 %v128_v28  ;;  %v125_v28 = vpack.c.bf16 %v117_v20, %v117_v20  ;;  %v3743_v20 = vld [vmem:[#allocation6 + $0x294] ss:$8 sps:$4 sm:$0xff]  }
  0xae   :  { %1844 = vmatpush1.bf16.msra.mxu0 %v3567_v23  ;;  %v3662_v23 = vld [vmem:[#allocation6 + $0x374] ss:$8 sps:$4 sm:$0xff]  }
  0xaf   :  { %1885 = vmatpush1.bf16.msra.mxu1 %v3570_v24  ;;  %1845 = vmatprep.subr.bf16.mxu0 %v3575_v27  ;;  %v122_v24 = vld [vmem:[%s4289_s12 + $0x28] sm:$0xff]  ;;  %v3660_v27 = vld [vmem:[#allocation6 + $0x370] ss:$8 sps:$4 sm:$0xff]  }
  0xb0   :  { %1886 = vmatprep.subr.bf16.mxu1 %v3578_v29  ;;  %v127_v29 = vpack.c.bf16 %v119_v21, %v119_v21  ;;  %v3746_v21 = vld [vmem:[#allocation6 + $0x394] ss:$8 sps:$4 sm:$0xff]  }
  0xb2   :  { %1846 = vmatpush1.bf16.msra.mxu0 %v3573_v30  ;;  %v3665_v30 = vld [vmem:[#allocation6 + $0x264] ss:$8 sps:$4 sm:$0xff]  }
  0xb3   :  { %1887 = vmatpush1.bf16.msra.mxu1 %v3576_v31  ;;  %1847 = vmatprep.subr.bf16.mxu0 %v3581_v32  ;;  %v3668_v31 = vld [vmem:[#allocation6 + $0x364] ss:$8 sps:$4 sm:$0xff]   ;;  %v3663_v32 = vld [vmem:[#allocation6 + $0x260] ss:$8 sps:$4 sm:$0xff]  }
  0xb4   :  { %1888 = vmatprep.subr.bf16.mxu1 %v3584_v33  ;;  %v130_v33 = vpack.c.bf16 %v122_v24, %v122_v24  ;;  %v3749_v24 = vld [vmem:[#allocation6 + $0x284] ss:$8 sps:$4 sm:$0xff]  }
  0xb6   :  { %1848 = vmatpush1.bf16.msra.mxu0 %v3579_v34  ;;  %v132_v34 = vpack.c.bf16 %v124_v25, %v124_v25  ;;  %v3752_v25 = vld [vmem:[#allocation6 + $0x384] ss:$8 sps:$4 sm:$0xff]  }
  0xb7   :  { %1889 = vmatpush1.bf16.msra.mxu1 %v3582_v35  ;;  %1849 = vmatprep.subr.bf16.mxu0 %v3587_v36  ;;  %v3666_v35 = vld [vmem:[#allocation6 + $0x360] ss:$8 sps:$4 sm:$0xff]   ;;  %v3671_v36 = vld [vmem:[#allocation6 + $0x254] ss:$8 sps:$4 sm:$0xff]  }
  0xb8   :  { %1890 = vmatprep.subr.bf16.mxu1 %v3590_v37  ;;  %v3674_v37 = vld [vmem:[#allocation6 + $0x354] ss:$8 sps:$4 sm:$0xff]  }
  0xba   :  { %1850 = vmatpush1.bf16.msra.mxu0 %v3585_v38  ;;  %v3669_v38 = vld [vmem:[#allocation6 + $0x250] ss:$8 sps:$4 sm:$0xff]  }
  0xbb   :  { %1891 = vmatpush1.bf16.msra.mxu1 %v3588_v39  ;;  %1851 = vmatprep.subr.bf16.mxu0 %v3593_v40  ;;  %v3672_v39 = vld [vmem:[#allocation6 + $0x350] ss:$8 sps:$4 sm:$0xff]   ;;  %v3677_v40 = vld [vmem:[#allocation6 + $0x244] ss:$8 sps:$4 sm:$0xff]  }
  0xbc   :  { %1892 = vmatprep.subr.bf16.mxu1 %v3596_v41  ;;  %v3680_v41 = vld [vmem:[#allocation6 + $0x344] ss:$8 sps:$4 sm:$0xff]  }
  0xbe   :  { %1852 = vmatpush1.bf16.msra.mxu0 %v3591_v42  ;;  %v3675_v42 = vld [vmem:[#allocation6 + $0x240] ss:$8 sps:$4 sm:$0xff]  }
  0xbf   :  { %1893 = vmatpush1.bf16.msra.mxu1 %v3594_v43  ;;  %1853 = vmatprep.subr.bf16.mxu0 %v3599_v44  ;;  %v3678_v43 = vld [vmem:[#allocation6 + $0x340] ss:$8 sps:$4 sm:$0xff]   ;;  %v3683_v44 = vld [vmem:[#allocation6 + $0x234] ss:$8 sps:$4 sm:$0xff]  }
  0xc0   :  { %1894 = vmatprep.subr.bf16.mxu1 %v3602_v45  ;;  %v3686_v45 = vld [vmem:[#allocation6 + $0x334] ss:$8 sps:$4 sm:$0xff]  }
  0xc2   :  { %1854 = vmatpush1.bf16.msra.mxu0 %v3597_v46  ;;  %v3681_v46 = vld [vmem:[#allocation6 + $0x230] ss:$8 sps:$4 sm:$0xff]  }
  0xc3   :  { %1895 = vmatpush1.bf16.msra.mxu1 %v3600_v47  ;;  %1855 = vmatprep.subr.bf16.mxu0 %v3605_v48  ;;  %v3684_v47 = vld [vmem:[#allocation6 + $0x330] ss:$8 sps:$4 sm:$0xff]   ;;  %v3689_v48 = vld [vmem:[#allocation6 + $0x224] ss:$8 sps:$4 sm:$0xff]  }
  0xc4   :  { %1896 = vmatprep.subr.bf16.mxu1 %v3608_v49  ;;  %v3692_v49 = vld [vmem:[#allocation6 + $0x324] ss:$8 sps:$4 sm:$0xff]  }
  0xc6   :  { %1856 = vmatpush1.bf16.msra.mxu0 %v3603_v50  ;;  %v3687_v50 = vld [vmem:[#allocation6 + $0x220] ss:$8 sps:$4 sm:$0xff]  }
  0xc7   :  { %1897 = vmatpush1.bf16.msra.mxu1 %v3606_v51  ;;  %1857 = vmatprep.subr.bf16.mxu0 %v3611_v52  ;;  %v3690_v51 = vld [vmem:[#allocation6 + $0x320] ss:$8 sps:$4 sm:$0xff]   ;;  %v3695_v52 = vld [vmem:[#allocation6 + $0x214] ss:$8 sps:$4 sm:$0xff]  }
  0xc8   :  { %1898 = vmatprep.subr.bf16.mxu1 %v3614_v53  ;;  %v3698_v53 = vld [vmem:[#allocation6 + $0x314] ss:$8 sps:$4 sm:$0xff]  }
  0xca   :  { %1858 = vmatpush2.bf16.msra.mxu0 %v3609_v54  ;;  %v3693_v54 = vld [vmem:[#allocation6 + $0x210] ss:$8 sps:$4 sm:$0xff]  }
  0xcb   :  { %1899 = vmatpush2.bf16.msra.mxu1 %v3612_v55  ;;  %1859 = vmatprep.subr.bf16.mxu0 %v3617_v56  ;;  %v3696_v55 = vld [vmem:[#allocation6 + $0x310] ss:$8 sps:$4 sm:$0xff]   ;;  %v3701_v56 = vld [vmem:[#allocation6 + $0x204] ss:$8 sps:$4 sm:$0xff]  }
  0xcc   :  { %1900 = vmatprep.subr.bf16.mxu1 %v3620_v57  ;;  %v3704_v57 = vld [vmem:[#allocation6 + $0x304] ss:$8 sps:$4 sm:$0xff]  }
  0xce   :  { %1860 = vmatpush2.bf16.msra.mxu0 %v3615_v58  ;;  %v3699_v58 = vld [vmem:[#allocation6 + $0x200] ss:$8 sps:$4 sm:$0xff]  }
  0xcf   :  { %1901 = vmatpush2.bf16.msra.mxu1 %v3618_v59  ;;  %1861 = vmatprep.subr.bf16.mxu0 %v3623_v60  ;;  %v3702_v59 = vld [vmem:[#allocation6 + $0x300] ss:$8 sps:$4 sm:$0xff]   ;;  %v3707_v60 = vld [vmem:[#allocation6 + $0x2f4] ss:$8 sps:$4 sm:$0xff]  }
  0xd0   :  { %1902 = vmatprep.subr.bf16.mxu1 %v3626_v61  ;;  %v3710_v61 = vld [vmem:[#allocation6 + $0x3f4] ss:$8 sps:$4 sm:$0xff]  }
  0xd2   :  { %1862 = vmatpush2.bf16.msra.mxu0 %v3621_v62  ;;  %v3705_v62 = vld [vmem:[#allocation6 + $0x2f0] ss:$8 sps:$4 sm:$0xff]  }
  0xd3   :  { %1903 = vmatpush2.bf16.msra.mxu1 %v3624_v63  ;;  %1863 = vmatprep.subr.bf16.mxu0 %v3629_v0  ;;  %v3708_v63 = vld [vmem:[#allocation6 + $0x3f0] ss:$8 sps:$4 sm:$0xff]   ;;  %v3713_v0 = vld [vmem:[#allocation6 + $0x2e4] ss:$8 sps:$4 sm:$0xff]  }
  0xd4   :  { %1904 = vmatprep.subr.bf16.mxu1 %v3632_v1  ;;  %v3716_v1 = vld [vmem:[#allocation6 + $0x3e4] ss:$8 sps:$4 sm:$0xff]  }
  0xd6   :  { %1864 = vmatpush2.bf16.msra.mxu0 %v3627_v2  ;;  %v3711_v2 = vld [vmem:[#allocation6 + $0x2e0] ss:$8 sps:$4 sm:$0xff]  }
  0xd7   :  { %1905 = vmatpush2.bf16.msra.mxu1 %v3630_v3  ;;  %1865 = vmatprep.subr.bf16.mxu0 %v3635_v4  ;;  %v3714_v3 = vld [vmem:[#allocation6 + $0x3e0] ss:$8 sps:$4 sm:$0xff]   ;;  %v3719_v4 = vld [vmem:[#allocation6 + $0x2d4] ss:$8 sps:$4 sm:$0xff]  }
  0xd8   :  { %1906 = vmatprep.subr.bf16.mxu1 %v3638_v5  ;;  %v3722_v5 = vld [vmem:[#allocation6 + $0x3d4] ss:$8 sps:$4 sm:$0xff]  }
  0xda   :  { %1866 = vmatpush2.bf16.msra.mxu0 %v3633_v6  ;;  %v3717_v6 = vld [vmem:[#allocation6 + $0x2d0] ss:$8 sps:$4 sm:$0xff]  }
  0xdb   :  { %1907 = vmatpush2.bf16.msra.mxu1 %v3636_v7  ;;  %1867 = vmatprep.subr.bf16.mxu0 %v3641_v8  ;;  %v3720_v7 = vld [vmem:[#allocation6 + $0x3d0] ss:$8 sps:$4 sm:$0xff]   ;;  %v3725_v8 = vld [vmem:[#allocation6 + $0x2c4] ss:$8 sps:$4 sm:$0xff]  }
  0xdc   :  { %1908 = vmatprep.subr.bf16.mxu1 %v3644_v9  ;;  %v3728_v9 = vld [vmem:[#allocation6 + $0x3c4] ss:$8 sps:$4 sm:$0xff]  }
  0xde   :  { %1868 = vmatpush2.bf16.msra.mxu0 %v3639_v10  ;;  %v3723_v10 = vld [vmem:[#allocation6 + $0x2c0] ss:$8 sps:$4 sm:$0xff]  }
  0xdf   :  { %1909 = vmatpush2.bf16.msra.mxu1 %v3642_v11  ;;  %1869 = vmatprep.subr.bf16.mxu0 %v3647_v12  ;;  %v3726_v11 = vld [vmem:[#allocation6 + $0x3c0] ss:$8 sps:$4 sm:$0xff]   ;;  %v3731_v12 = vld [vmem:[#allocation6 + $0x2b4] ss:$8 sps:$4 sm:$0xff]  }
  0xe0   :  { %1910 = vmatprep.subr.bf16.mxu1 %v3650_v13  ;;  %v3734_v13 = vld [vmem:[#allocation6 + $0x3b4] ss:$8 sps:$4 sm:$0xff]  }
  0xe2   :  { %1870 = vmatpush2.bf16.msra.mxu0 %v3645_v14  ;;  %v3729_v14 = vld [vmem:[#allocation6 + $0x2b0] ss:$8 sps:$4 sm:$0xff]  }
  0xe3   :  { %1911 = vmatpush2.bf16.msra.mxu1 %v3648_v15  ;;  %1871 = vmatprep.subr.bf16.mxu0 %v3653_v16  ;;  %v3732_v15 = vld [vmem:[#allocation6 + $0x3b0] ss:$8 sps:$4 sm:$0xff]   ;;  %v3737_v16 = vld [vmem:[#allocation6 + $0x2a4] ss:$8 sps:$4 sm:$0xff]  }
  0xe4   :  { %1912 = vmatprep.subr.bf16.mxu1 %v3656_v17  ;;  %v3740_v17 = vld [vmem:[#allocation6 + $0x3a4] ss:$8 sps:$4 sm:$0xff]  }
  0xe6   :  { %1872 = vmatpush2.bf16.msra.mxu0 %v3651_v18  ;;  %v3735_v18 = vld [vmem:[#allocation6 + $0x2a0] ss:$8 sps:$4 sm:$0xff]  }
  0xe7   :  { %1913 = vmatpush2.bf16.msra.mxu1 %v3654_v19  ;;  %1923 = vmatprep.subr.bf16.mxu0 %v3659_v22  ;;  %v3738_v19 = vld [vmem:[#allocation6 + $0x3a0] ss:$8 sps:$4 sm:$0xff]   ;;  %v3741_v22 = vld [vmem:[#allocation6 + $0x290] ss:$8 sps:$4 sm:$0xff]  }
  0xe8   :  { %1964 = vmatprep.subr.bf16.mxu1 %v3662_v23  ;;  %v3744_v23 = vld [vmem:[#allocation6 + $0x390] ss:$8 sps:$4 sm:$0xff]  }
  0xe9   :  { %1874 = vmatmul.mubr.bf16.vlgmr.msra.gmra.mxu0 %v125_v28  ;;  %v121_v28 = vld [vmem:[%s4289_s12 + $0x20] sm:$0xff] }
  0xea   :  { %1915 = vmatmul.mubr.bf16.vlgmr.msra.gmra.mxu1 %v127_v29  ;;  %1924 = vmatpush1.bf16.msra.mxu0 %v3657_v26  ;;  %v3747_v26 = vld [vmem:[#allocation6 + $0x280] ss:$8 sps:$4 sm:$0xff]   ;;  %v123_v29 = vld [vmem:[%s4289_s12 + $0x30] sm:$0xff] }
  0xeb   :  { %1965 = vmatpush1.bf16.msra.mxu1 %v3660_v27  ;;  %1925 = vmatprep.subr.bf16.mxu0 %v3665_v30  ;;  %v3750_v27 = vld [vmem:[#allocation6 + $0x380] ss:$8 sps:$4 sm:$0xff]   ;;  %v3753_v30 = vld [vmem:[%s4270_s4 + $0x78] sm:$0xff]  }
  0xec   :  { %1966 = vmatprep.subr.bf16.mxu1 %v3668_v31  ;;  %1955 = vmatprep.mubr.bf16.mxu0 %v130_v33  ;;  %v129_v31 = vpack.c.bf16 %v121_v28, %v121_v28  ;;  %v3754_v33 = vld [vmem:[%s4270_s4 + $0x38] sm:$0xff]  }
  0xed   :  { %1996 = vmatprep.mubr.bf16.mxu1 %v132_v34  ;;  %v3755_v34 = vld [vmem:[%s4270_s4 + $0x70] sm:$0xff]  }
  0xee   :  { %1926 = vmatpush1.bf16.msra.mxu0 %v3663_v32  ;;  %v131_v32 = vpack.c.bf16 %v123_v29, %v123_v29 }
  0xef   :  { %1967 = vmatpush1.bf16.msra.mxu1 %v3666_v35  ;;  %1927 = vmatprep.subr.bf16.mxu0 %v3671_v36 }
  0xf0   :  { %1968 = vmatprep.subr.bf16.mxu1 %v3674_v37 }
  0xf2   :  { %1928 = vmatpush1.bf16.msra.mxu0 %v3669_v38  ;;  %v3756_v38 = vld [vmem:[%s4270_s4 + $0x30] sm:$0xff]  }
  0xf3   :  { %1969 = vmatpush1.bf16.msra.mxu1 %v3672_v39  ;;  %1929 = vmatprep.subr.bf16.mxu0 %v3677_v40 }
  0xf4   :  { %1970 = vmatprep.subr.bf16.mxu1 %v3680_v41  ;;  %v3757_v41 = vld [vmem:[%s4270_s4 + $0x68] sm:$0xff]  }
  0xf6   :  { %1930 = vmatpush1.bf16.msra.mxu0 %v3675_v42 }
  0xf7   :  { %1971 = vmatpush1.bf16.msra.mxu1 %v3678_v43  ;;  %1931 = vmatprep.subr.bf16.mxu0 %v3683_v44  ;;  %v3758_v44 = vld [vmem:[%s4270_s4 + $0x28] sm:$0xff]  }
  0xf8   :  { %1972 = vmatprep.subr.bf16.mxu1 %v3686_v45  ;;  %v3759_v45 = vld [vmem:[%s4270_s4 + $0x60] sm:$0xff]  }
  0xfa   :  { %1932 = vmatpush1.bf16.msra.mxu0 %v3681_v46 }
  0xfb   :  { %1973 = vmatpush1.bf16.msra.mxu1 %v3684_v47  ;;  %1933 = vmatprep.subr.bf16.mxu0 %v3689_v48  ;;  %v3769_v48 = vld [vmem:[%s4274_s8 + $0x78] sm:$0xff]  }
  0xfc   :  { %1974 = vmatprep.subr.bf16.mxu1 %v3692_v49  ;;  %v3770_v49 = vld [vmem:[%s4274_s8 + $0x38] sm:$0xff]  }
  0xfe   :  { %1934 = vmatpush1.bf16.msra.mxu0 %v3687_v50  ;;  %v3771_v50 = vld [vmem:[%s4274_s8 + $0x70] sm:$0xff]  }
  0xff   :  { %1975 = vmatpush1.bf16.msra.mxu1 %v3690_v51  ;;  %1935 = vmatprep.subr.bf16.mxu0 %v3695_v52  ;;  %v3760_v51 = vld [vmem:[%s4270_s4 + $0x20] sm:$0xff]   ;;  %v3772_v52 = vld [vmem:[%s4274_s8 + $0x30] sm:$0xff]  }
 0x100   :  { %1976 = vmatprep.subr.bf16.mxu1 %v3698_v53  ;;  %v3761_v53 = vld [vmem:[%s4270_s4 + $0x58] sm:$0xff]  }
 0x102   :  { %1936 = vmatpush1.bf16.msra.mxu0 %v3693_v54  ;;  %v3773_v54 = vld [vmem:[%s4274_s8 + $0x68] sm:$0xff]  }
 0x103   :  { %1977 = vmatpush1.bf16.msra.mxu1 %v3696_v55  ;;  %1937 = vmatprep.subr.bf16.mxu0 %v3701_v56  ;;  %v3762_v55 = vld [vmem:[%s4270_s4 + $0x18] sm:$0xff]   ;;  %v3774_v56 = vld [vmem:[%s4274_s8 + $0x28] sm:$0xff]  }
 0x104   :  { %1978 = vmatprep.subr.bf16.mxu1 %v3704_v57  ;;  %v3763_v57 = vld [vmem:[%s4270_s4 + $0x50] sm:$0xff]  }
 0x106   :  { %1938 = vmatpush1.bf16.msra.mxu0 %v3699_v58  ;;  %v3775_v58 = vld [vmem:[%s4274_s8 + $0x60] sm:$0xff]  }
 0x107   :  { %1979 = vmatpush1.bf16.msra.mxu1 %v3702_v59  ;;  %1939 = vmatprep.subr.bf16.mxu0 %v3707_v60  ;;  %v3764_v59 = vld [vmem:[%s4270_s4 + $0x10] sm:$0xff]   ;;  %v3776_v60 = vld [vmem:[%s4274_s8 + $0x20] sm:$0xff]  }
 0x108   :  { %1980 = vmatprep.subr.bf16.mxu1 %v3710_v61  ;;  %v3765_v61 = vld [vmem:[%s4270_s4 + $0x48] sm:$0xff]  }
 0x10a   :  { %1940 = vmatpush2.bf16.msra.mxu0 %v3705_v62  ;;  %v3777_v62 = vld [vmem:[%s4274_s8 + $0x58] sm:$0xff]  }
 0x10b   :  { %1981 = vmatpush2.bf16.msra.mxu1 %v3708_v63  ;;  %1941 = vmatprep.subr.bf16.mxu0 %v3713_v0  ;;  %v3766_v63 = vld [vmem:[%s4270_s4 + $0x8] sm:$0xff]   ;;  %v3778_v0 = vld [vmem:[%s4274_s8 + $0x18] sm:$0xff]  }
 0x10c   :  { %1982 = vmatprep.subr.bf16.mxu1 %v3716_v1  ;;  %v3767_v1 = vld [vmem:[%s4270_s4 + $0x40] sm:$0xff]  }
 0x10e   :  { %1942 = vmatpush2.bf16.msra.mxu0 %v3711_v2  ;;  %v3768_v2 = vld [vmem:[%s4270_s4] sm:$0xff]  }
 0x10f   :  { %1983 = vmatpush2.bf16.msra.mxu1 %v3714_v3  ;;  %1943 = vmatprep.subr.bf16.mxu0 %v3719_v4  ;;  %v2049_v3 = vlaneseq }
 0x110   :  { %1984 = vmatprep.subr.bf16.mxu1 %v3722_v5 }
 0x111   :  { %v4117_v4 = vshrl.u32 %v2049_v3, 7 }
 0x112   :  { %1944 = vmatpush2.bf16.msra.mxu0 %v3717_v6  ;;  %v2014_v6 = vld [vmem:[%s4269_s3] sm:$0x3] }
 0x113   :  { %1985 = vmatpush2.bf16.msra.mxu1 %v3720_v7  ;;  %1945 = vmatprep.subr.bf16.mxu0 %v3725_v8  ;;  %v2051_v5 = vsub.s32 0, %v4117_v4  ;;  %v2055_v7 = vsub.s32 1, %v4117_v4  ;;  %v3130_v4 = vld [vmem:[%s4271_s5] ss:$0 sm:$0xff] }
 0x114   :  { %1986 = vmatprep.subr.bf16.mxu1 %v3728_v9 }
 0x116   :  { %1946 = vmatpush2.bf16.msra.mxu0 %v3723_v10  ;;  %v3779_v10 = vld [vmem:[%s4274_s8 + $0x50] sm:$0xff]  }
 0x117   :  { %1987 = vmatpush2.bf16.msra.mxu1 %v3726_v11  ;;  %1947 = vmatprep.subr.bf16.mxu0 %v3731_v12 }
 0x118   :  { %1988 = vmatprep.subr.bf16.mxu1 %v3734_v13  ;;  %v2052_v13 = vrot.slane %v2014_v6, %v2051_v5 }
 0x11a   :  { %1948 = vmatpush2.bf16.msra.mxu0 %v3729_v14  ;;  %v3780_v14 = vld [vmem:[%s4274_s8 + $0x10] sm:$0xff]  }
 0x11b   :  { %1989 = vmatpush2.bf16.msra.mxu1 %v3732_v15  ;;  %1949 = vmatprep.subr.bf16.mxu0 %v3737_v16 }
 0x11c   :  { %1990 = vmatprep.subr.bf16.mxu1 %v3740_v17 }
 0x11e   :  { %1950 = vmatpush2.bf16.msra.mxu0 %v3735_v18 }
 0x11f   :  { %1991 = vmatpush2.bf16.msra.mxu1 %v3738_v19  ;;  %1951 = vmatprep.subr.bf16.mxu0 %v3743_v20  ;;  %v2056_v19 = vrot.slane %v2014_v6, %v2055_v7 }
 0x120   :  { %1992 = vmatprep.subr.bf16.mxu1 %v3746_v21 }
 0x122   :  { %1952 = vmatpush2.bf16.msra.mxu0 %v3741_v22  ;;  %v3781_v22 = vld [vmem:[%s4274_s8 + $0x48] sm:$0xff]  }
 0x123   :  { %1993 = vmatpush2.bf16.msra.mxu1 %v3744_v23  ;;  %1953 = vmatprep.subr.bf16.mxu0 %v3749_v24 }
 0x124   :  { %1994 = vmatprep.subr.bf16.mxu1 %v3752_v25  ;;  %v3782_v25 = vld [vmem:[%s4274_s8 + $0x8] sm:$0xff]  }
 0x126   :  { %1954 = vmatpush2.bf16.msra.mxu0 %v3747_v26 }
 0x127   :  { %1995 = vmatpush2.bf16.msra.mxu1 %v3750_v27  ;;  %3200 = vmatprep.subr.bf16.mxu0 %v3753_v30  ;;  %v3783_v30 = vld [vmem:[%s4274_s8 + $0x40] sm:$0xff]  }
 0x128   :  { %3222 = vmatprep.subr.bf16.mxu1 %v3769_v48 }
 0x129   :  { %v937_v35 = vpop.f32.mrf.mxu0  ;;  %1956 = vmatmul.mubr.bf16.vlgmr.msra.gmra.mxu0 %v129_v31 }
 0x12a   :  { %v978_v36 = vpop.f32.mrf.mxu1  ;;  %1997 = vmatmul.mubr.bf16.vlgmr.msra.gmra.mxu1 %v131_v32  ;;  %3201 = vmatpush3.bf16.msra.mxu0 %v3754_v33  ;;  %v3784_v32 = vld [vmem:[%s4274_s8] sm:$0xff]  }
 0x12b   :  { %v4046_v37 = vadd.f32 %v978_v36, %v937_v35  ;;  %v939_v39 = vpop.f32.mrf.mxu0  ;;  %3202 = vmatprep.subr.bf16.mxu0 %v3755_v34  ;;  %3223 = vmatpush3.bf16.msra.mxu1 %v3770_v49  ;;  %v3785_v35 = vld [vmem:[%s4276_s10 + $0x38] sm:$0xff]   ;;  %v3888_v36 = vmov 0.0  }
 0x12c   :  { %v980_v40 = vpop.f32.mrf.mxu1  ;;  %3224 = vmatprep.subr.bf16.mxu1 %v3771_v50 }
 0x12d   :  { %v941_v42 = vpop.f32.mrf.mxu0  ;;  %v981_v11 = vadd.f32 %v980_v40, %v939_v39  ;;  %v3788_v39 = vld [vmem:[%s4276_s10 + $0x20] sm:$0xff]   ;;  %v3789_v40 = vld [vmem:[%s4276_s10 + $0x18] sm:$0xff]  }
 0x12e   :  { %v982_v43 = vpop.f32.mrf.mxu1  ;;  %3203 = vmatpush3.bf16.msra.mxu0 %v3756_v38  ;;  %v3787_v38 = vld [vmem:[%s4276_s10 + $0x28] sm:$0xff]  }
 0x12f   :  { %v942_v46 = vpop.f32.mrf.mxu0  ;;  %3204 = vmatprep.subr.bf16.mxu0 %v3757_v41  ;;  %3225 = vmatpush3.bf16.msra.mxu1 %v3772_v52  ;;  %v3790_v41 = vld [vmem:[%s4276_s10 + $0x10] sm:$0xff]   ;;  %v3792_v52 = vld [vmem:[%s4276_s10] sm:$0xff]  }
 0x130   :  { %v983_v47 = vpop.f32.mrf.mxu1  ;;  %3226 = vmatprep.subr.bf16.mxu1 %v3773_v54 }
 0x132   :  { %3205 = vmatpush3.bf16.msra.mxu0 %v3758_v44 }
 0x133   :  { %3206 = vmatprep.subr.bf16.mxu0 %v3759_v45  ;;  %3227 = vmatpush3.bf16.msra.mxu1 %v3774_v56 }
 0x134   :  { %3228 = vmatprep.subr.bf16.mxu1 %v3775_v58 }
 0x136   :  { %3207 = vmatpush3.bf16.msra.mxu0 %v3760_v51  ;;  %v3791_v51 = vld [vmem:[%s4276_s10 + $0x8] sm:$0xff]  }
 0x137   :  { %3208 = vmatprep.subr.bf16.mxu0 %v3761_v53  ;;  %3229 = vmatpush3.bf16.msra.mxu1 %v3776_v60  ;;  %v2209_v53 = vld [vmem:[%s4273_s7] sm:$0x3] }
 0x138   :  { %3230 = vmatprep.subr.bf16.mxu1 %v3777_v62  ;;  %v2247_v58 = vrot.slane %v2209_v53, %v2051_v5 }
 0x13a   :  { %3209 = vmatpush3.bf16.msra.mxu0 %v3762_v55 }
 0x13b   :  { %3210 = vmatprep.subr.bf16.mxu0 %v3763_v57  ;;  %3231 = vmatpush3.bf16.msra.mxu1 %v3778_v0 }
 0x13c   :  { %3232 = vmatprep.subr.bf16.mxu1 %v3779_v10 }
 0x13e   :  { %3211 = vmatpush3.bf16.msra.mxu0 %v3764_v59 }
 0x13f   :  { %3212 = vmatprep.subr.bf16.mxu0 %v3765_v61  ;;  %3233 = vmatpush3.bf16.msra.mxu1 %v3780_v14 }
 0x140   :  { %3234 = vmatprep.subr.bf16.mxu1 %v3781_v22  ;;  %v3802_v22 = vld [vmem:[#allocation8 + $0x30] sm:$0xff]  }
 0x142   :  { %3213 = vmatpush3.bf16.msra.mxu0 %v3766_v63  ;;  %v2251_v63 = vrot.slane %v2209_v53, %v2055_v7  ;;  %v3810_v53 = vld [vmem:[#allocation8 + $0x30] sm:$0xff]  }
 0x143   :  { %3214 = vmatprep.subr.bf16.mxu0 %v3767_v1  ;;  %3235 = vmatpush3.bf16.msra.mxu1 %v3782_v25  ;;  %v3796_v25 = vld [vmem:[%s4276_s10 + $0x20] sm:$0xff]  }
 0x144   :  { %3236 = vmatprep.subr.bf16.mxu1 %v3783_v30  ;;  %v3806_v30 = vld [vmem:[#allocation8 + $0x10] sm:$0xff]  }
 0x146   :  { %3215 = vmatpush3.bf16.msra.mxu0 %v3768_v2 }
 0x147   :  { %3237 = vmatpush3.bf16.msra.mxu1 %v3784_v32  ;;  %3280 = vmatprep.subr.bf16.mxu0 %v3888_v36  ;;  %v3800_v32 = vld [vmem:[%s4276_s10] sm:$0xff]  }
 0x148   :  { %3300 = vmatprep.subr.bf16.mxu1 %v3888_v36 }
 0x169   :  { %v1019_v8 = vpop.f32.mrf.mxu0 }
 0x16a   :  { %v1060_v9 = vpop.f32.mrf.mxu1  ;;  %v1020_v12 = vadd.f32 %v1019_v8, %v4046_v37  ;;  %v3786_v37 = vld [vmem:[%s4276_s10 + $0x30] sm:$0xff]  }
 0x16b   :  { %v1021_v15 = vpop.f32.mrf.mxu0 }
 0x16c   :  { %v1062_v16 = vpop.f32.mrf.mxu1  ;;  %v1061_v17 = vadd.f32 %v1060_v9, %v1020_v12  ;;  %v1022_v18 = vadd.f32 %v1021_v15, %v981_v11 }
 0x16d   :  { %v1023_v20 = vpop.f32.mrf.mxu0 }
 0x16e   :  { %v1064_v21 = vpop.f32.mrf.mxu1  ;;  %v2059_v23 = vadd.f32 %v2052_v13, %v1061_v17  ;;  %v1063_v24 = vadd.f32 %v1062_v16, %v1022_v18  ;;  %v3793_v18 = vld [vmem:[%s4276_s10 + $0x38] sm:$0xff]  }
 0x16f   :  { %v1024_v26 = vpop.f32.mrf.mxu0  ;;  %v3801_v20 = vld [vmem:[#allocation8 + $0x38] sm:$0xff]   ;;  %v3794_v21 = vld [vmem:[%s4276_s10 + $0x30] sm:$0xff]  }
 0x170   :  { %v1065_v27 = vpop.f32.mrf.mxu1  ;;  %v2060_v28 = vadd.f32 %v2056_v19, %v1063_v24  ;;  %v2061_v29 = vmax.f32 %v2059_v23, 0.0  ;;  %v3795_v23 = vld [vmem:[%s4276_s10 + $0x28] sm:$0xff]   ;;  %v3804_v26 = vld [vmem:[#allocation8 + $0x20] sm:$0xff]  }
 0x171   :  { %v3803_v24 = vld [vmem:[#allocation8 + $0x28] sm:$0xff]   ;;  %v3797_v27 = vld [vmem:[%s4276_s10 + $0x18] sm:$0xff]  }
 0x172   :  { %v2062_v31 = vmax.f32 %v2060_v28, 0.0  ;;  %v2063_v34 = vpack.c.bf16 %v2061_v29, %v2061_v29  ;;  %v3805_v28 = vld [vmem:[#allocation8 + $0x18] sm:$0xff]   ;;  %v3798_v29 = vld [vmem:[%s4276_s10 + $0x10] sm:$0xff]  }
 0x174   :  { %v2064_v33 = vpack.c.bf16 %v2062_v31, %v2062_v31  ;;  %v3799_v31 = vld [vmem:[%s4276_s10 + $0x8] sm:$0xff]  }
 0x176   :  { %2199 = vmatprep.mubr.bf16.mxu0 %v2064_v33  ;;  %v3807_v33 = vld [vmem:[#allocation8 + $0x8] sm:$0xff]  }
 0x177   :  { %2200 = vmatmul.mubr.bf16.vlgmr.msra.gmra.mxu0 %v2063_v34  ;;  %v3808_v34 = vld [vmem:[#allocation8] sm:$0xff]  }
 0x178   :  { %3281 = vmatpush3.bf16.msra.mxu0 %v3785_v35  ;;  %3296 = vmatprep.mubr.msk.bf16.mxu0 %vm3889_vm0, %v3888_v36 }
 0x179   :  { %3282 = vmatprep.subr.bf16.mxu0 %v3888_v36 }
 0x17c   :  { %3283 = vmatpush3.bf16.msra.mxu0 %v3786_v37  ;;  %v3147_v37 = vld [vmem:[%s4275_s9] ss:$0 sm:$0xff] }
 0x17d   :  { %3284 = vmatprep.subr.bf16.mxu0 %v3888_v36 }
 0x180   :  { %3285 = vmatpush3.bf16.msra.mxu0 %v3787_v38 }
 0x181   :  { %3286 = vmatprep.subr.bf16.mxu0 %v3888_v36 }
 0x184   :  { %3287 = vmatpush3.bf16.msra.mxu0 %v3788_v39 }
 0x185   :  { %3288 = vmatprep.subr.bf16.mxu0 %v3888_v36 }
 0x188   :  { %3289 = vmatpush3.bf16.msra.mxu0 %v3789_v40 }
 0x189   :  { %3290 = vmatprep.subr.bf16.mxu0 %v3888_v36 }
 0x18c   :  { %3291 = vmatpush3.bf16.msra.mxu0 %v3790_v41 }
 0x18d   :  { %3292 = vmatprep.subr.bf16.mxu0 %v3888_v36 }
 0x190   :  { %3293 = vmatpush3.bf16.msra.mxu0 %v3791_v51 }
 0x191   :  { %3294 = vmatprep.subr.bf16.mxu0 %v3888_v36 }
 0x194   :  { %3295 = vmatpush3.bf16.msra.mxu0 %v3792_v52 }
 0x195   :  { %3320 = vmatprep.subr.bf16.mxu0 %v3888_v36 }
 0x1a9   :  { %v1875_v42 = vpop.f32.mrf.mxu0 }
 0x1aa   :  { %v1916_v43 = vpop.f32.mrf.mxu1 }
 0x1ab   :  { %v1917_v44 = vadd.f32 %v1916_v43, %v1875_v42  ;;  %v1877_v45 = vpop.f32.mrf.mxu0 }
 0x1ac   :  { %v1918_v46 = vpop.f32.mrf.mxu1 }
 0x1ad   :  { %v1879_v47 = vpop.f32.mrf.mxu0  ;;  %v1919_v56 = vadd.f32 %v1918_v46, %v1877_v45 }
 0x1ae   :  { %v1920_v48 = vpop.f32.mrf.mxu1 }
 0x1af   :  { %v1880_v49 = vpop.f32.mrf.mxu0 }
 0x1b0   :  { %v1921_v50 = vpop.f32.mrf.mxu1 }
 0x1b1   :  { %v3809_v50 = vld [vmem:[#allocation8 + $0x38] sm:$0xff]  }
 0x1e9   :  { %v1957_v54 = vpop.f32.mrf.mxu0 }
 0x1ea   :  { %v1998_v55 = vpop.f32.mrf.mxu1  ;;  %v1958_v57 = vadd.f32 %v1957_v54, %v1917_v44  ;;  %v3164_v44 = vld [vmem:[%s4277_s11] ss:$0 sm:$0xff]  ;;  %v3811_v54 = vld [vmem:[#allocation8 + $0x28] sm:$0xff]  }
 0x1eb   :  { %v1959_v59 = vpop.f32.mrf.mxu0 }
 0x1ec   :  { %v2000_v60 = vpop.f32.mrf.mxu1  ;;  %v1999_v61 = vadd.f32 %v1998_v55, %v1958_v57  ;;  %v1960_v62 = vadd.f32 %v1959_v59, %v1919_v56  ;;  %v3812_v55 = vld [vmem:[#allocation8 + $0x20] sm:$0xff]   ;;  %v3813_v56 = vld [vmem:[#allocation8 + $0x18] sm:$0xff]   ;;  %v3814_v57 = vld [vmem:[#allocation8 + $0x10] sm:$0xff]  }
 0x1ed   :  { %v1961_v0 = vpop.f32.mrf.mxu0  ;;  %v3816_v59 = vld [vmem:[#allocation8] sm:$0xff]  }
 0x1ee   :  { %v2002_v1 = vpop.f32.mrf.mxu1  ;;  %v2254_v2 = vadd.f32 %v2247_v58, %v1999_v61  ;;  %v2001_v3 = vadd.f32 %v2000_v60, %v1960_v62  ;;  %v3815_v58 = vld [vmem:[#allocation8 + $0x8] sm:$0xff]  }
 0x1ef   :  { %v1962_v6 = vpop.f32.mrf.mxu0 }
 0x1f0   :  { %v2003_v8 = vpop.f32.mrf.mxu1  ;;  %v2255_v9 = vadd.f32 %v2251_v63, %v2001_v3  ;;  %v2256_v10 = vmax.f32 %v2254_v2, 0.0  ;;  %v3173_v3 = vld [vmem:[%s4279_s13] ss:$0 sm:$0xff] }
 0x1f2   :  { %v2257_v11 = vmax.f32 %v2255_v9, 0.0  ;;  %v2258_v13 = vpack.c.bf16 %v2256_v10, %v2256_v10 }
 0x1f4   :  { %v2259_v12 = vpack.c.bf16 %v2257_v11, %v2257_v11 }
 0x1f6   :  { %2394 = vmatprep.mubr.bf16.mxu1 %v2259_v12 }
 0x1f7   :  { %2395 = vmatmul.mubr.bf16.vlgmr.msra.gmra.mxu1 %v2258_v13 }
 0x1f8   :  { %3316 = vmatprep.mubr.msk.bf16.mxu1 %vm3889_vm0, %v3888_v36  ;;  %3301 = vmatpush3.bf16.msra.mxu1 %v3801_v20 }
 0x1f9   :  { %3302 = vmatprep.subr.bf16.mxu1 %v3888_v36 }
 0x1fc   :  { %3303 = vmatpush3.bf16.msra.mxu1 %v3802_v22 }
 0x1fd   :  { %3304 = vmatprep.subr.bf16.mxu1 %v3888_v36 }
 0x200   :  { %3305 = vmatpush3.bf16.msra.mxu1 %v3803_v24 }
 0x201   :  { %3306 = vmatprep.subr.bf16.mxu1 %v3888_v36 }
 0x204   :  { %3307 = vmatpush3.bf16.msra.mxu1 %v3804_v26 }
 0x205   :  { %3308 = vmatprep.subr.bf16.mxu1 %v3888_v36 }
 0x208   :  { %3309 = vmatpush3.bf16.msra.mxu1 %v3805_v28 }
 0x209   :  { %3310 = vmatprep.subr.bf16.mxu1 %v3888_v36 }
 0x20c   :  { %3311 = vmatpush3.bf16.msra.mxu1 %v3806_v30 }
 0x20d   :  { %3312 = vmatprep.subr.bf16.mxu1 %v3888_v36 }
 0x210   :  { %3313 = vmatpush3.bf16.msra.mxu1 %v3807_v33 }
 0x211   :  { %3314 = vmatprep.subr.bf16.mxu1 %v3888_v36 }
 0x214   :  { %3315 = vmatpush3.bf16.msra.mxu1 %v3808_v34 }
 0x215   :  { %3340 = vmatprep.subr.bf16.mxu1 %v3888_v36 }
 0x237   :  { %v3216_v5 = vpop.f32.mrf.mxu0 }
 0x239   :  { %v3217_v7 = vpop.f32.mrf.mxu0 }
 0x23a   :  { %v3218_v14 = vadd.f32 %v3217_v7, %v3216_v5 }
 0x23b   :  { %v3219_v15 = vpop.f32.mrf.mxu0 }
 0x23c   :  { %v2202_v16 = vadd.f32 %v3218_v14, %v3130_v4 }
 0x23d   :  { %v3220_v17 = vpop.f32.mrf.mxu0 }
 0x23e   :  { %2402 = vst [vmem:[%s4280_s14] sm:$0xff] %v2202_v16  ;;  %v2404_v19 = vpack.c.bf16 %v2202_v16, %v2202_v16 }
 0x240   :  { %3297 = vmatmul.mubr.bf16.vlgmr.msra.gmra.mxu0 %v2404_v19 }
 0x241   :  { %3321 = vmatpush3.bf16.msra.mxu0 %v3793_v18  ;;  %3336 = vmatprep.mubr.msk.bf16.mxu0 %vm3889_vm0, %v3888_v36 }
 0x242   :  { %3322 = vmatprep.subr.bf16.mxu0 %v3888_v36 }
 0x245   :  { %3323 = vmatpush3.bf16.msra.mxu0 %v3794_v21 }
 0x246   :  { %3324 = vmatprep.subr.bf16.mxu0 %v3888_v36 }
 0x249   :  { %3325 = vmatpush3.bf16.msra.mxu0 %v3795_v23 }
 0x24a   :  { %3326 = vmatprep.subr.bf16.mxu0 %v3888_v36 }
 0x24d   :  { %3327 = vmatpush3.bf16.msra.mxu0 %v3796_v25 }
 0x24e   :  { %3328 = vmatprep.subr.bf16.mxu0 %v3888_v36 }
 0x251   :  { %3329 = vmatpush3.bf16.msra.mxu0 %v3797_v27 }
 0x252   :  { %3330 = vmatprep.subr.bf16.mxu0 %v3888_v36 }
 0x255   :  { %3331 = vmatpush3.bf16.msra.mxu0 %v3798_v29 }
 0x256   :  { %3332 = vmatprep.subr.bf16.mxu0 %v3888_v36 }
 0x259   :  { %3333 = vmatpush3.bf16.msra.mxu0 %v3799_v31 }
 0x25a   :  { %3334 = vmatprep.subr.bf16.mxu0 %v3888_v36 }
 0x25d   :  { %3335 = vmatpush3.bf16.msra.mxu0 %v3800_v32 }
 0x2b7   :  { %v3238_v35 = vpop.f32.mrf.mxu1 }
 0x2b9   :  { %v3239_v38 = vpop.f32.mrf.mxu1 }
 0x2ba   :  { %v3240_v39 = vadd.f32 %v3239_v38, %v3238_v35 }
 0x2bb   :  { %v3241_v40 = vpop.f32.mrf.mxu1 }
 0x2bc   :  { %v2397_v41 = vadd.f32 %v3240_v39, %v3147_v37 }
 0x2bd   :  { %v3242_v42 = vpop.f32.mrf.mxu1 }
 0x2be   :  { %2403 = vst [vmem:[%s4281_s15] sm:$0xff] %v2397_v41  ;;  %v2630_v43 = vpack.c.bf16 %v2397_v41, %v2397_v41 }
 0x2c0   :  { %3337 = vmatmul.mubr.bf16.vlgmr.msra.gmra.mxu0 %v2630_v43 }
 0x300   :  { %v2510_v45 = vpop.f32.mrf.mxu0 }
 0x301   :  { %v2511_v46 = vadd.f32 %v3164_v44, %v2510_v45 }
 0x302   :  { %v3298_v47 = vpop.f32.mrf.mxu0 }
 0x303   :  { %v2516_v48 = vmax.f32 %v2511_v46, 0.0 }
 0x304   :  { %v2513_v49 = vpop.f32.mrf.mxu0 }
 0x305   :  { %v2517_v51 = vpack.c.bf16 %v2516_v48, %v2516_v48 }
 0x306   :  { %v3299_v52 = vpop.f32.mrf.mxu0 }
 0x307   :  { %3317 = vmatmul.mubr.bf16.vlgmr.msra.gmra.mxu1 %v2517_v51 }
 0x308   :  { %3341 = vmatpush3.bf16.msra.mxu1 %v3809_v50  ;;  %3356 = vmatprep.mubr.msk.bf16.mxu1 %vm3889_vm0, %v3888_v36 }
 0x309   :  { %3342 = vmatprep.subr.bf16.mxu1 %v3888_v36 }
 0x30c   :  { %3343 = vmatpush3.bf16.msra.mxu1 %v3810_v53 }
 0x30d   :  { %3344 = vmatprep.subr.bf16.mxu1 %v3888_v36 }
 0x310   :  { %3345 = vmatpush3.bf16.msra.mxu1 %v3811_v54 }
 0x311   :  { %3346 = vmatprep.subr.bf16.mxu1 %v3888_v36 }
 0x314   :  { %3347 = vmatpush3.bf16.msra.mxu1 %v3812_v55 }
 0x315   :  { %3348 = vmatprep.subr.bf16.mxu1 %v3888_v36 }
 0x318   :  { %3349 = vmatpush3.bf16.msra.mxu1 %v3813_v56 }
 0x319   :  { %3350 = vmatprep.subr.bf16.mxu1 %v3888_v36 }
 0x31c   :  { %3351 = vmatpush3.bf16.msra.mxu1 %v3814_v57 }
 0x31d   :  { %3352 = vmatprep.subr.bf16.mxu1 %v3888_v36 }
 0x320   :  { %3353 = vmatpush3.bf16.msra.mxu1 %v3815_v58 }
 0x321   :  { %3354 = vmatprep.subr.bf16.mxu1 %v3888_v36 }
 0x324   :  { %3355 = vmatpush3.bf16.msra.mxu1 %v3816_v59 }
 0x380   :  { %v2736_v60 = vpop.f32.mrf.mxu0 }
 0x381   :  { %v2737_v61 = vadd.f32 %v3164_v44, %v2736_v60 }
 0x382   :  { %v3338_v62 = vpop.f32.mrf.mxu0 }
 0x383   :  { %v2742_v63 = vmax.f32 %v2737_v61, 0.0 }
 0x384   :  { %v2739_v0 = vpop.f32.mrf.mxu0 }
 0x385   :  { %v2743_v1 = vpack.c.bf16 %v2742_v63, %v2742_v63 }
 0x386   :  { %v3339_v2 = vpop.f32.mrf.mxu0 }
 0x387   :  { %3357 = vmatmul.mubr.bf16.vlgmr.msra.gmra.mxu1 %v2743_v1 }
 0x3c7   :  { %v2623_v6 = vpop.f32.mrf.mxu1 }
 0x3c8   :  { %v2624_v8 = vadd.f32 %v3173_v3, %v2623_v6 }
 0x3c9   :  { %v3318_v9 = vpop.f32.mrf.mxu1 }
 0x3ca   :  { %2629 = vst [vmem:[%s4282_s16] sm:$0xff] %v2624_v8 }
 0x3cb   :  { %v2626_v36 = vpop.f32.mrf.mxu1 }
 0x3cd   :  { %v3319_v10 = vpop.f32.mrf.mxu1 }
 0x447   :  { %v2849_v11 = vpop.f32.mrf.mxu1 }
 0x448   :  { %v2850_v12 = vadd.f32 %v3173_v3, %v2849_v11 }
 0x449   :  { %v3358_v13 = vpop.f32.mrf.mxu1 }
 0x44a   :  { %2855 = vst [vmem:[%s4283_s17] sm:$0xff] %v2850_v12 }
 0x44b   :  { %v2852_v5 = vpop.f32.mrf.mxu1 }
 0x44d   :  { %v3359_v4 = vpop.f32.mrf.mxu1 }
 0x44e   :  { %2872 = vsyncpa [#allocation5], 1 }
 0x44f   :  { %2873 = vsyncpa [#allocation7], 1 }

</bundles_post_ra>
